<compile_context>
chip_gen: v6e
topology: v6e:2x2x1
jax: 0.10.0
libtpu: 0.0.40
codegen_flags: <defaults>
</compile_context>

<pallas_src>
import functools

import jax
import jax.numpy as jnp
from jax.experimental import pallas as pl
from jax.experimental.pallas import tpu as pltpu

_VMEM_LIMIT = 48 * 1024 * 1024        # <= v7x's 64 MiB physical with headroom; fine on v5e/v6e
_STREAM_BUDGET = 40 * 1024 * 1024     # target working set when picking the streaming tile
_RESIDENT_BUDGET = 16 * 1024 * 1024   # whole-problem budget for the single-kernel path


def _round_up(a, b):
    return (a + b - 1) // b * b


def _pick_tm(d, k):
    """Largest streaming data tile (rows) whose double-buffered working set fits budget."""
    for tm in (1024, 512, 256, 128, 64):
        need = 4 * (2 * tm * d        # x tile, double-buffered
                    + 4 * tm * k      # (TM, K) intermediates (s, dist, cand, onehot)
                    + 2 * d * k       # resident centers^T
                    + 2 * k * d       # per-core sums block
                    + 4 * k)
        if need <= _STREAM_BUDGET:
            return tm
    return 64


def _resident_fits(np8, d, k, iteration):
    need = 4 * (2 * np8 * d           # data block (assume double-buffered)
                + 4 * np8 * k         # (NP, K) intermediates
                + np8                 # row/valid/x2 columns
                + max(iteration, 1) * k * d
                + 4 * k * d
                + 2 * k)
    return need <= _RESIDENT_BUDGET


# ----------------------------------------------------------------------------
# Path A: data resident in VMEM, all iterations + mode=0 in ONE kernel
# ----------------------------------------------------------------------------
def _kmeans_resident_kernel(x_ref, c0_ref, repl_ref, avg_ref, classes_ref, index_ref,
                            c_sc, *, n_valid, iteration, np_total):
    x = x_ref[...]                                                     # (NP, D) f32
    k = c0_ref.shape[0]
    c_sc[...] = c0_ref[...]

    rows = jax.lax.broadcasted_iota(jnp.int32, (x.shape[0], 1), 0)     # (NP, 1)
    ids = jax.lax.broadcasted_iota(jnp.int32, (1, k), 1)               # (1, K)
    valid = rows < n_valid                                             # (NP, 1)
    ones_n = jnp.ones((x.shape[0], 1), jnp.float32)                    # hoisted
    ones_d = jnp.ones((1, x.shape[1]), jnp.float32)                    # hoisted

    for it in range(iteration):                                        # static unroll (small)
        c = c_sc[...]                                                  # (K, D)
        # ||c_k||^2 as a (1, K) row via an MXU matmul (avoids cross-layout reshapes).
        c2 = jax.lax.dot_general(ones_d, c * c, (((1,), (1,)), ((), ())),
                                 preferred_element_type=jnp.float32)   # (1, K)
        # relative squared distance: ||c||^2 - 2 <x, c>   (||x||^2 dropped)
        s = jax.lax.dot_general(x, c, (((1,), (1,)), ((), ())),
                                preferred_element_type=jnp.float32)    # (NP, K)  MXU
        dist = c2 - 2.0 * s
        mins = jnp.min(dist, axis=1, keepdims=True)                    # (NP, 1)
        cand = jnp.where(dist == mins, ids, k)
        assign = jnp.min(cand, axis=1, keepdims=True)                  # (NP, 1) first-occurrence

        onehot = jnp.where((ids == assign) & valid, 1.0, 0.0)          # (NP, K) f32
        sums = jax.lax.dot_general(onehot, x, (((0,), (0,)), ((), ())),
                                   preferred_element_type=jnp.float32)  # (K, D)  MXU
        cnts = jax.lax.dot_general(onehot, ones_n, (((0,), (0,)), ((), ())),
                                   preferred_element_type=jnp.float32)  # (K, 1)  MXU
        newc = sums / cnts                                              # empty -> 0/0 -> NaN

        dead = jnp.any(jnp.isnan(newc), axis=1, keepdims=True)          # (K, 1)
        c_sc[...] = jnp.where(dead, repl_ref[it], newc)                  # on-device reseed

        if it == iteration - 1:
            classes_ref[...] = assign.astype(jnp.int32)                  # last-iter assignments

    # mode=0: for each FINAL center, index of the nearest data point.
    cfin = c_sc[...]
    s0 = jax.lax.dot_general(x, cfin, (((1,), (1,)), ((), ())),
                             preferred_element_type=jnp.float32)        # (NP, K)
    x2 = jnp.sum(x * x, axis=1, keepdims=True)                          # (NP, 1)
    dist0 = jnp.where(valid, x2 - 2.0 * s0, jnp.inf)                    # ||c||^2 dropped
    tmin = jnp.min(dist0, axis=0, keepdims=True)                        # (1, K)
    candr = jnp.where(dist0 == tmin, rows, np_total)
    index_ref[...] = jnp.min(candr, axis=0, keepdims=True).astype(jnp.int32)
    avg_ref[...] = cfin


def kmeans_resident(data_p, n_valid, c0, repl, iteration):
    np8, d = data_p.shape
    k = c0.shape[0]
    n_rep = repl.shape[0]

    avg, classes, index = pl.pallas_call(
        functools.partial(_kmeans_resident_kernel, n_valid=n_valid,
                          iteration=iteration, np_total=np8),
        out_shape=(
            jax.ShapeDtypeStruct((k, d), jnp.float32),
            jax.ShapeDtypeStruct((np8, 1), jnp.int32),
            jax.ShapeDtypeStruct((1, k), jnp.int32),
        ),
        grid_spec=pltpu.PrefetchScalarGridSpec(
            num_scalar_prefetch=0,
            grid=(1,),
            in_specs=[
                pl.BlockSpec((np8, d), lambda i: (0, 0)),
                pl.BlockSpec((k, d), lambda i: (0, 0)),
                pl.BlockSpec((n_rep, k, d), lambda i: (0, 0, 0)),
            ],
            out_specs=[
                pl.BlockSpec((k, d), lambda i: (0, 0)),
                pl.BlockSpec((np8, 1), lambda i: (0, 0)),
                pl.BlockSpec((1, k), lambda i: (0, 0)),
            ],
            scratch_shapes=[pltpu.VMEM((k, d), jnp.float32)],
        ),
        compiler_params=pltpu.CompilerParams(
            dimension_semantics=("arbitrary",),
            vmem_limit_bytes=_VMEM_LIMIT,
        ),
    )(data_p, c0, repl)
    return avg, classes[:n_valid, 0], index[0]


# ----------------------------------------------------------------------------
# Path B (streaming): fused per-point nearest center + per-cluster sums/counts
# ----------------------------------------------------------------------------
def _assign_accumulate_kernel(x_ref, ct_ref, c2_ref, assign_ref, sum_ref, cnt_ref,
                              *, n_valid, tm, tiles_per_core):
    core = pl.program_id(0)
    i = pl.program_id(1)

    @pl.when(i == 0)
    def _():
        sum_ref[...] = jnp.zeros_like(sum_ref)
        cnt_ref[...] = jnp.zeros_like(cnt_ref)

    x = x_ref[...]                                                   # (TM, D)
    ct = ct_ref[...]                                                 # (D, K) resident
    c2 = c2_ref[...]                                                 # (1, K) resident
    k = ct.shape[1]

    s = jnp.dot(x, ct, preferred_element_type=jnp.float32)           # (TM, K)  MXU
    dist = c2 - 2.0 * s                                              # ||x||^2 dropped

    ids = jax.lax.broadcasted_iota(jnp.int32, (1, k), 1)             # narrow (1, K)
    mins = jnp.min(dist, axis=1, keepdims=True)                      # (TM, 1)
    cand = jnp.where(dist == mins, ids, k)
    argidx = jnp.min(cand, axis=1, keepdims=True)                    # (TM, 1) first-occurrence
    assign_ref[...] = argidx.astype(jnp.int32)

    base = (core * tiles_per_core + i) * tm
    rows = jax.lax.broadcasted_iota(jnp.int32, (tm, 1), 0) + base    # narrow (TM, 1)
    onehot = jnp.where((ids == argidx) & (rows < n_valid), 1.0, 0.0)  # (TM, K)

    sum_ref[...] += jax.lax.dot_general(
        onehot, x, (((0,), (0,)), ((), ())),
        preferred_element_type=jnp.float32)[None]                     # (1, K, D)
    cnt_ref[...] += jnp.sum(onehot, axis=0, keepdims=True)[None]      # (1, 1, K)


def assign_and_accumulate(data_padded, n_valid, centers, tm):
    np_, d = data_padded.shape
    k = centers.shape[0]
    tiles_per_core = np_ // (2 * tm)

    ct = centers.T.astype(jnp.float32)                                # (D, K)
    c2 = jnp.sum(centers.astype(jnp.float32) ** 2, axis=1)[None, :]   # (1, K)

    assign, sums, cnts = pl.pallas_call(
        functools.partial(_assign_accumulate_kernel, n_valid=n_valid, tm=tm,
                          tiles_per_core=tiles_per_core),
        out_shape=(
            jax.ShapeDtypeStruct((np_, 1), jnp.int32),
            jax.ShapeDtypeStruct((2, k, d), jnp.float32),             # per-core partials
            jax.ShapeDtypeStruct((2, 1, k), jnp.float32),
        ),
        grid_spec=pltpu.PrefetchScalarGridSpec(
            num_scalar_prefetch=0,
            grid=(2, tiles_per_core),
            in_specs=[
                pl.BlockSpec((tm, d), lambda c, i: (c * tiles_per_core + i, 0)),
                pl.BlockSpec((d, k), lambda c, i: (0, 0)),
                pl.BlockSpec((1, k), lambda c, i: (0, 0)),
            ],
            out_specs=[
                pl.BlockSpec((tm, 1), lambda c, i: (c * tiles_per_core + i, 0)),
                pl.BlockSpec((1, k, d), lambda c, i: (c, 0, 0)),
                pl.BlockSpec((1, 1, k), lambda c, i: (c, 0, 0)),
            ],
        ),
        compiler_params=pltpu.CompilerParams(
            dimension_semantics=("parallel", "arbitrary"),   # core axis sharded on v7x
            vmem_limit_bytes=_VMEM_LIMIT,
        ),
    )(data_padded, ct, c2)
    return assign[:n_valid, 0], jnp.sum(sums, axis=0), jnp.sum(cnts, axis=0)[0]


# ----------------------------------------------------------------------------
# Path B (streaming): mode=0 — for each center, index of the nearest data point
# ----------------------------------------------------------------------------
def _nearest_point_kernel(x_ref, ct_ref, idx_ref, bestd_ref,
                          *, n_valid, tm, tiles_per_core, np_total):
    core = pl.program_id(0)
    i = pl.program_id(1)

    @pl.when(i == 0)
    def _():
        idx_ref[...] = jnp.zeros_like(idx_ref)
        bestd_ref[...] = jnp.full(bestd_ref.shape, jnp.inf, bestd_ref.dtype)

    x = x_ref[...]
    ct = ct_ref[...]

    x2 = jnp.sum(x * x, axis=1, keepdims=True)                       # (TM, 1)
    s = jnp.dot(x, ct, preferred_element_type=jnp.float32)           # (TM, K)  MXU
    dist = x2 - 2.0 * s                                              # ||c||^2 dropped

    base = (core * tiles_per_core + i) * tm
    rows = jax.lax.broadcasted_iota(jnp.int32, (tm, 1), 0) + base
    dist = jnp.where(rows < n_valid, dist, jnp.inf)                  # mask padded rows

    tmin = jnp.min(dist, axis=0, keepdims=True)                      # (1, K)
    candr = jnp.where(dist == tmin, rows, np_total)
    targ = jnp.min(candr, axis=0, keepdims=True)                     # (1, K) first occurrence

    better = tmin[None] < bestd_ref[...]                             # earlier tiles win ties
    idx_ref[...] = jnp.where(better, targ[None], idx_ref[...])
    bestd_ref[...] = jnp.where(better, tmin[None], bestd_ref[...])


def nearest_data_point(data_padded, n_valid, centers, tm):
    np_, d = data_padded.shape
    k = centers.shape[0]
    tiles_per_core = np_ // (2 * tm)
    ct = centers.T.astype(jnp.float32)

    idx, bestd = pl.pallas_call(
        functools.partial(_nearest_point_kernel, n_valid=n_valid, tm=tm,
                          tiles_per_core=tiles_per_core, np_total=np_),
        out_shape=(
            jax.ShapeDtypeStruct((2, 1, k), jnp.int32),
            jax.ShapeDtypeStruct((2, 1, k), jnp.float32),
        ),
        grid_spec=pltpu.PrefetchScalarGridSpec(
            num_scalar_prefetch=0,
            grid=(2, tiles_per_core),
            in_specs=[
                pl.BlockSpec((tm, d), lambda c, i: (c * tiles_per_core + i, 0)),
                pl.BlockSpec((d, k), lambda c, i: (0, 0)),
            ],
            out_specs=[
                pl.BlockSpec((1, 1, k), lambda c, i: (c, 0, 0)),
                pl.BlockSpec((1, 1, k), lambda c, i: (c, 0, 0)),
            ],
        ),
        compiler_params=pltpu.CompilerParams(
            dimension_semantics=("parallel", "arbitrary"),
            vmem_limit_bytes=_VMEM_LIMIT,
        ),
    )(data_padded, ct)
    # core 0 owns the lower row indices, so <= keeps the first occurrence on ties
    take0 = bestd[0] <= bestd[1]
    return jnp.where(take0, idx[0], idx[1])[0]


# ----------------------------------------------------------------------------
# KMeansLayer.forward equivalent (jit-able end to end)
# ----------------------------------------------------------------------------
def kmeans_layer_forward(data, clusters, iteration, key):
    """Returns (avg_center, classes, centers, index) like KMeansLayer.forward."""
    n, d = data.shape
    data = data.astype(jnp.float32)
    k = clusters

    # random center init: c = data[randperm(N)[:clusters]]
    key, k0 = jax.random.split(key)
    perm = jax.random.permutation(k0, n)
    c = data[perm[:clusters]]

    # reseed candidates for all iterations, precomputed once (cheap randint instead of a
    # per-iteration O(N log N) permutation; distinctness is irrelevant for N >> clusters)
    key, kr = jax.random.split(key)
    reseed_idx = jax.random.randint(kr, (max(iteration, 1), clusters), 0, n)
    repl = data[reseed_idx]                                           # (iter, K, D)

    np8 = _round_up(n, 8)
    if _resident_fits(np8, d, k, iteration):
        # -------- Path A: whole problem in VMEM, one kernel launch --------
        data_p = data if np8 == n else jnp.concatenate(
            [data, jnp.zeros((np8 - n, d), jnp.float32)], axis=0)
        avg_center, a, index = kmeans_resident(data_p, n, c, repl, iteration)
    else:
        # -------- Path B: stream data tiles from HBM once per iteration --------
        tm = _pick_tm(d, k)
        np_ = _round_up(n, 2 * tm)                # 2x: leading dual-TensorCore grid axis
        data_p = data if np_ == n else jnp.concatenate(
            [data, jnp.zeros((np_ - n, d), jnp.float32)], axis=0)
        a = None
        for it in range(iteration):
            a, sums, cnts = assign_and_accumulate(data_p, n, c, tm)
            c = sums / cnts[:, None]              # empty cluster -> 0/0 -> NaN (as torch)
            dead = jnp.any(jnp.isnan(c), axis=1)
            c = jnp.where(dead[:, None], repl[it], c)
        # mode=0 must use the centers AFTER the final update+reseed -> separate pass here.
        index = nearest_data_point(data_p, n, c, tm)
        avg_center = c

    center = data[index]
    return avg_center, a, center, index


if __name__ == "__main__":
    # deterministic "module config" and inputs
    CLUSTERS = 8       # KMeansLayer(centers=8, ...)
    ITERATION = 3      # KMeansLayer(..., iteration=3)
    N, D = 64, 32      # data: [samples, dimension]

    key = jax.random.PRNGKey(0)
    key, kd = jax.random.split(key)
    data = jax.random.normal(kd, (N, D), dtype=jnp.float32)

    fwd = jax.jit(kmeans_layer_forward, static_argnums=(1, 2))
    avg_center, classes, centers, index = fwd(data, CLUSTERS, ITERATION, key)
    jax.block_until_ready((avg_center, classes, centers, index))

    assert avg_center.shape == (CLUSTERS, D)
    assert classes.shape == (N,)
    assert centers.shape == (CLUSTERS, D)
    assert index.shape == (CLUSTERS,)
    assert bool(jnp.all((classes >= 0) & (classes < CLUSTERS)))
    assert bool(jnp.all((index >= 0) & (index < N)))
    assert bool(jnp.all(jnp.isfinite(avg_center)))

    # Streaming-path smoke test (exercises the tiled, dual-core kernels at tiny N too)
    # and cross-checks them against a brute-force reference with the final centers.
    c_test = avg_center
    tm = _pick_tm(D, CLUSTERS)
    np_ = _round_up(N, 2 * tm)
    data_p = jnp.concatenate([data, jnp.zeros((np_ - N, D), jnp.float32)], axis=0)
    a_s, sums_s, cnts_s = assign_and_accumulate(data_p, N, c_test, tm)
    idx_s = nearest_data_point(data_p, N, c_test, tm)
    jax.block_until_ready((a_s, sums_s, cnts_s, idx_s))

    d_full = jnp.sum((data[:, None, :] - c_test[None, :, :]) ** 2, axis=-1)   # (N, K)
    chosen = jnp.take_along_axis(d_full, a_s[:, None], axis=1)[:, 0]
    assert bool(jnp.all(chosen <= jnp.min(d_full, axis=1) + 1e-3))
    onehot_ref = jax.nn.one_hot(a_s, CLUSTERS, dtype=jnp.float32)
    assert bool(jnp.allclose(sums_s, onehot_ref.T @ data, atol=1e-3, rtol=1e-3))
    assert bool(jnp.allclose(cnts_s, onehot_ref.sum(0), atol=1e-3))
    chosen_p = jnp.take_along_axis(d_full, idx_s[None, :], axis=0)[0]
    assert bool(jnp.all(chosen_p <= jnp.min(d_full, axis=0) + 1e-3))

    print("KERNEL_OK")
</pallas_src>

<mosaic_0001>
module attributes {stable_mosaic.version = 11 : i64} {
  func.func @_kmeans_resident_kernel(%arg0: i32, %arg1: memref<64x32xf32, #tpu.memory_space<vmem>>, %arg2: memref<8x32xf32, #tpu.memory_space<vmem>>, %arg3: memref<3x8x32xf32, #tpu.memory_space<vmem>>, %arg4: memref<8x32xf32, #tpu.memory_space<vmem>>, %arg5: memref<64x1xi32, #tpu.memory_space<vmem>>, %arg6: memref<1x8xi32, #tpu.memory_space<vmem>>, %arg7: memref<8x32xf32, #tpu.memory_space<vmem>>) attributes {dimension_semantics = [#tpu.dimension_semantics<arbitrary>], iteration_bounds = array<i64: 1>, scalar_prefetch = 0 : i64, scratch_operands = 1 : i64, tpu.core_type = #tpu.core_type<tc>, window_params = [{pipeline_mode = #tpu.pipeline_mode<synchronous>, transform_indices = @transform_0, window_bounds = array<i64: 64, 32>}, {pipeline_mode = #tpu.pipeline_mode<synchronous>, transform_indices = @transform_1, window_bounds = array<i64: 8, 32>}, {pipeline_mode = #tpu.pipeline_mode<synchronous>, transform_indices = @transform_2, window_bounds = array<i64: 3, 8, 32>}, {pipeline_mode = #tpu.pipeline_mode<synchronous>, transform_indices = @transform_3, window_bounds = array<i64: 8, 32>}, {pipeline_mode = #tpu.pipeline_mode<synchronous>, transform_indices = @transform_4, window_bounds = array<i64: 64, 1>}, {pipeline_mode = #tpu.pipeline_mode<synchronous>, transform_indices = @transform_5, window_bounds = array<i64: 1, 8>}]} {
    %c0 = arith.constant 0 : index
    %c0_0 = arith.constant 0 : index
    %0 = vector.load %arg1[%c0, %c0_0] : memref<64x32xf32, #tpu.memory_space<vmem>>, vector<64x32xf32>
    %c0_1 = arith.constant 0 : index
    %c0_2 = arith.constant 0 : index
    %1 = vector.load %arg2[%c0_1, %c0_2] : memref<8x32xf32, #tpu.memory_space<vmem>>, vector<8x32xf32>
    %c0_3 = arith.constant 0 : index
    %c0_4 = arith.constant 0 : index
    %2 = vector.load %arg7[%c0_3, %c0_4] : memref<8x32xf32, #tpu.memory_space<vmem>>, vector<8x32xf32>
    tpu.vector_store %arg7[%c0_3, %c0_4], %1 {strides = array<i32>} : memref<8x32xf32, #tpu.memory_space<vmem>>, vector<8x32xf32>,
    %3 = tpu.iota {dimensions = array<i32: 0>} : vector<64x1xi32>
    %4 = tpu.iota {dimensions = array<i32: 1>} : vector<1x8xi32>
    %c64_i32 = arith.constant 64 : i32
    %5 = vector.broadcast %c64_i32 : i32 to vector<64x1xi32>
    %6 = arith.cmpi slt, %3, %5 : vector<64x1xi32>
    %cst = arith.constant 1.000000e+00 : f32
    %7 = vector.broadcast %cst : f32 to vector<64x1xf32>
    %cst_5 = arith.constant 1.000000e+00 : f32
    %8 = vector.broadcast %cst_5 : f32 to vector<1x32xf32>
    %c0_6 = arith.constant 0 : index
    %c0_7 = arith.constant 0 : index
    %9 = vector.load %arg7[%c0_6, %c0_7] : memref<8x32xf32, #tpu.memory_space<vmem>>, vector<8x32xf32>
    %10 = arith.mulf %9, %9 : vector<8x32xf32>
    %cst_8 = arith.constant dense<0.000000e+00> : vector<1x8xf32>
    %11 = tpu.matmul %8, %10, %cst_8 {dimension_numbers = #tpu.dot_dimension_numbers<[1], [1], [0], [0], [0, 0, 1, 0], [], []>} : vector<1x32xf32>, vector<8x32xf32>, vector<1x8xf32> -> vector<1x8xf32>
    %cst_9 = arith.constant dense<0.000000e+00> : vector<64x8xf32>
    %12 = tpu.matmul %0, %9, %cst_9 {dimension_numbers = #tpu.dot_dimension_numbers<[1], [1], [0], [0], [0, 0, 1, 0], [], []>} : vector<64x32xf32>, vector<8x32xf32>, vector<64x8xf32> -> vector<64x8xf32>
    %cst_10 = arith.constant 2.000000e+00 : f32
    %13 = vector.broadcast %cst_10 : f32 to vector<64x8xf32>
    %14 = arith.mulf %13, %12 : vector<64x8xf32>
    %15 = vector.broadcast %11 : vector<1x8xf32> to vector<64x8xf32>
    %16 = arith.subf %15, %14 : vector<64x8xf32>
    %cst_11 = arith.constant dense<0x7F800000> : vector<64xf32>
    %17 = vector.multi_reduction <minimumf>, %16, %cst_11 [1] : vector<64x8xf32> to vector<64xf32>
    %18 = vector.shape_cast %17 : vector<64xf32> to vector<64x1xf32>
    %19 = vector.broadcast %18 : vector<64x1xf32> to vector<64x8xf32>
    %20 = arith.cmpf oeq, %16, %19 : vector<64x8xf32>
    %c8_i32 = arith.constant 8 : i32
    %21 = vector.shape_cast %4 : vector<1x8xi32> to vector<1x8xi32>
    %22 = vector.broadcast %21 : vector<1x8xi32> to vector<64x8xi32>
    %23 = vector.broadcast %c8_i32 : i32 to vector<64x8xi32>
    %24 = arith.select %20, %22, %23 : vector<64x8xi1>, vector<64x8xi32>
    %cst_12 = arith.constant dense<2147483647> : vector<64xi32>
    %25 = vector.multi_reduction <minsi>, %24, %cst_12 [1] : vector<64x8xi32> to vector<64xi32>
    %26 = vector.shape_cast %25 : vector<64xi32> to vector<64x1xi32>
    %27 = vector.broadcast %4 : vector<1x8xi32> to vector<64x8xi32>
    %28 = vector.broadcast %26 : vector<64x1xi32> to vector<64x8xi32>
    %29 = arith.cmpi eq, %27, %28 : vector<64x8xi32>
    %30 = vector.broadcast %6 : vector<64x1xi1> to vector<64x8xi1>
    %31 = arith.andi %29, %30 : vector<64x8xi1>
    %cst_13 = arith.constant 1.000000e+00 : f32
    %cst_14 = arith.constant 0.000000e+00 : f32
    %32 = vector.broadcast %cst_13 : f32 to vector<64x8xf32>
    %33 = vector.broadcast %cst_14 : f32 to vector<64x8xf32>
    %34 = arith.select %31, %32, %33 : vector<64x8xi1>, vector<64x8xf32>
    %cst_15 = arith.constant dense<0.000000e+00> : vector<8x32xf32>
    %35 = tpu.matmul %34, %0, %cst_15 {dimension_numbers = #tpu.dot_dimension_numbers<[0], [0], [1], [1], [0, 1, 1, 1], [], []>} : vector<64x8xf32>, vector<64x32xf32>, vector<8x32xf32> -> vector<8x32xf32>
    %cst_16 = arith.constant dense<0.000000e+00> : vector<8x1xf32>
    %36 = tpu.matmul %34, %7, %cst_16 {dimension_numbers = #tpu.dot_dimension_numbers<[0], [0], [1], [1], [0, 1, 1, 1], [], []>} : vector<64x8xf32>, vector<64x1xf32>, vector<8x1xf32> -> vector<8x1xf32>
    %37 = vector.broadcast %36 : vector<8x1xf32> to vector<8x32xf32>
    %38 = arith.divf %35, %37 : vector<8x32xf32>
    %39 = arith.cmpf one, %38, %38 : vector<8x32xf32>
    %cst_17 = arith.constant 1.000000e+00 : f32
    %cst_18 = arith.constant 0.000000e+00 : f32
    %40 = vector.broadcast %cst_17 : f32 to vector<8x32xf32>
    %41 = vector.broadcast %cst_18 : f32 to vector<8x32xf32>
    %42 = arith.select %39, %40, %41 : vector<8x32xi1>, vector<8x32xf32>
    %cst_19 = arith.constant dense<0xFF800000> : vector<8xf32>
    %43 = vector.multi_reduction <maximumf>, %42, %cst_19 [1] : vector<8x32xf32> to vector<8xf32>
    %cst_20 = arith.constant 0.000000e+00 : f32
    %44 = vector.broadcast %cst_20 : f32 to vector<8xf32>
    %45 = arith.cmpf ogt, %43, %44 : vector<8xf32>
    %46 = vector.shape_cast %45 : vector<8xi1> to vector<8x1xi1>
    %c0_21 = arith.constant 0 : index
    %c0_22 = arith.constant 0 : index
    %c0_23 = arith.constant 0 : index
    %47 = vector.load %arg3[%c0_21, %c0_22, %c0_23] : memref<3x8x32xf32, #tpu.memory_space<vmem>>, vector<1x8x32xf32>
    %48 = vector.shape_cast %47 : vector<1x8x32xf32> to vector<8x32xf32>
    %49 = vector.shape_cast %46 : vector<8x1xi1> to vector<8x1xi1>
    %50 = vector.broadcast %49 : vector<8x1xi1> to vector<8x32xi1>
    %51 = arith.select %50, %48, %38 : vector<8x32xi1>, vector<8x32xf32>
    %c0_24 = arith.constant 0 : index
    %c0_25 = arith.constant 0 : index
    %52 = vector.load %arg7[%c0_24, %c0_25] : memref<8x32xf32, #tpu.memory_space<vmem>>, vector<8x32xf32>
    tpu.vector_store %arg7[%c0_24, %c0_25], %51 {strides = array<i32>} : memref<8x32xf32, #tpu.memory_space<vmem>>, vector<8x32xf32>,
    %c0_26 = arith.constant 0 : index
    %c0_27 = arith.constant 0 : index
    %53 = vector.load %arg7[%c0_26, %c0_27] : memref<8x32xf32, #tpu.memory_space<vmem>>, vector<8x32xf32>
    %54 = arith.mulf %53, %53 : vector<8x32xf32>
    %cst_28 = arith.constant dense<0.000000e+00> : vector<1x8xf32>
    %55 = tpu.matmul %8, %54, %cst_28 {dimension_numbers = #tpu.dot_dimension_numbers<[1], [1], [0], [0], [0, 0, 1, 0], [], []>} : vector<1x32xf32>, vector<8x32xf32>, vector<1x8xf32> -> vector<1x8xf32>
    %cst_29 = arith.constant dense<0.000000e+00> : vector<64x8xf32>
    %56 = tpu.matmul %0, %53, %cst_29 {dimension_numbers = #tpu.dot_dimension_numbers<[1], [1], [0], [0], [0, 0, 1, 0], [], []>} : vector<64x32xf32>, vector<8x32xf32>, vector<64x8xf32> -> vector<64x8xf32>
    %cst_30 = arith.constant 2.000000e+00 : f32
    %57 = vector.broadcast %cst_30 : f32 to vector<64x8xf32>
    %58 = arith.mulf %57, %56 : vector<64x8xf32>
    %59 = vector.broadcast %55 : vector<1x8xf32> to vector<64x8xf32>
    %60 = arith.subf %59, %58 : vector<64x8xf32>
    %cst_31 = arith.constant dense<0x7F800000> : vector<64xf32>
    %61 = vector.multi_reduction <minimumf>, %60, %cst_31 [1] : vector<64x8xf32> to vector<64xf32>
    %62 = vector.shape_cast %61 : vector<64xf32> to vector<64x1xf32>
    %63 = vector.broadcast %62 : vector<64x1xf32> to vector<64x8xf32>
    %64 = arith.cmpf oeq, %60, %63 : vector<64x8xf32>
    %c8_i32_32 = arith.constant 8 : i32
    %65 = vector.shape_cast %4 : vector<1x8xi32> to vector<1x8xi32>
    %66 = vector.broadcast %65 : vector<1x8xi32> to vector<64x8xi32>
    %67 = vector.broadcast %c8_i32_32 : i32 to vector<64x8xi32>
    %68 = arith.select %64, %66, %67 : vector<64x8xi1>, vector<64x8xi32>
    %cst_33 = arith.constant dense<2147483647> : vector<64xi32>
    %69 = vector.multi_reduction <minsi>, %68, %cst_33 [1] : vector<64x8xi32> to vector<64xi32>
    %70 = vector.shape_cast %69 : vector<64xi32> to vector<64x1xi32>
    %71 = vector.broadcast %4 : vector<1x8xi32> to vector<64x8xi32>
    %72 = vector.broadcast %70 : vector<64x1xi32> to vector<64x8xi32>
    %73 = arith.cmpi eq, %71, %72 : vector<64x8xi32>
    %74 = vector.broadcast %6 : vector<64x1xi1> to vector<64x8xi1>
    %75 = arith.andi %73, %74 : vector<64x8xi1>
    %cst_34 = arith.constant 1.000000e+00 : f32
    %cst_35 = arith.constant 0.000000e+00 : f32
    %76 = vector.broadcast %cst_34 : f32 to vector<64x8xf32>
    %77 = vector.broadcast %cst_35 : f32 to vector<64x8xf32>
    %78 = arith.select %75, %76, %77 : vector<64x8xi1>, vector<64x8xf32>
    %cst_36 = arith.constant dense<0.000000e+00> : vector<8x32xf32>
    %79 = tpu.matmul %78, %0, %cst_36 {dimension_numbers = #tpu.dot_dimension_numbers<[0], [0], [1], [1], [0, 1, 1, 1], [], []>} : vector<64x8xf32>, vector<64x32xf32>, vector<8x32xf32> -> vector<8x32xf32>
    %cst_37 = arith.constant dense<0.000000e+00> : vector<8x1xf32>
    %80 = tpu.matmul %78, %7, %cst_37 {dimension_numbers = #tpu.dot_dimension_numbers<[0], [0], [1], [1], [0, 1, 1, 1], [], []>} : vector<64x8xf32>, vector<64x1xf32>, vector<8x1xf32> -> vector<8x1xf32>
    %81 = vector.broadcast %80 : vector<8x1xf32> to vector<8x32xf32>
    %82 = arith.divf %79, %81 : vector<8x32xf32>
    %83 = arith.cmpf one, %82, %82 : vector<8x32xf32>
    %cst_38 = arith.constant 1.000000e+00 : f32
    %cst_39 = arith.constant 0.000000e+00 : f32
    %84 = vector.broadcast %cst_38 : f32 to vector<8x32xf32>
    %85 = vector.broadcast %cst_39 : f32 to vector<8x32xf32>
    %86 = arith.select %83, %84, %85 : vector<8x32xi1>, vector<8x32xf32>
    %cst_40 = arith.constant dense<0xFF800000> : vector<8xf32>
    %87 = vector.multi_reduction <maximumf>, %86, %cst_40 [1] : vector<8x32xf32> to vector<8xf32>
    %cst_41 = arith.constant 0.000000e+00 : f32
    %88 = vector.broadcast %cst_41 : f32 to vector<8xf32>
    %89 = arith.cmpf ogt, %87, %88 : vector<8xf32>
    %90 = vector.shape_cast %89 : vector<8xi1> to vector<8x1xi1>
    %c1 = arith.constant 1 : index
    %c0_42 = arith.constant 0 : index
    %c0_43 = arith.constant 0 : index
    %91 = vector.load %arg3[%c1, %c0_42, %c0_43] : memref<3x8x32xf32, #tpu.memory_space<vmem>>, vector<1x8x32xf32>
    %92 = vector.shape_cast %91 : vector<1x8x32xf32> to vector<8x32xf32>
    %93 = vector.shape_cast %90 : vector<8x1xi1> to vector<8x1xi1>
    %94 = vector.broadcast %93 : vector<8x1xi1> to vector<8x32xi1>
    %95 = arith.select %94, %92, %82 : vector<8x32xi1>, vector<8x32xf32>
    %c0_44 = arith.constant 0 : index
    %c0_45 = arith.constant 0 : index
    %96 = vector.load %arg7[%c0_44, %c0_45] : memref<8x32xf32, #tpu.memory_space<vmem>>, vector<8x32xf32>
    tpu.vector_store %arg7[%c0_44, %c0_45], %95 {strides = array<i32>} : memref<8x32xf32, #tpu.memory_space<vmem>>, vector<8x32xf32>,
    %c0_46 = arith.constant 0 : index
    %c0_47 = arith.constant 0 : index
    %97 = vector.load %arg7[%c0_46, %c0_47] : memref<8x32xf32, #tpu.memory_space<vmem>>, vector<8x32xf32>
    %98 = arith.mulf %97, %97 : vector<8x32xf32>
    %cst_48 = arith.constant dense<0.000000e+00> : vector<1x8xf32>
    %99 = tpu.matmul %8, %98, %cst_48 {dimension_numbers = #tpu.dot_dimension_numbers<[1], [1], [0], [0], [0, 0, 1, 0], [], []>} : vector<1x32xf32>, vector<8x32xf32>, vector<1x8xf32> -> vector<1x8xf32>
    %cst_49 = arith.constant dense<0.000000e+00> : vector<64x8xf32>
    %100 = tpu.matmul %0, %97, %cst_49 {dimension_numbers = #tpu.dot_dimension_numbers<[1], [1], [0], [0], [0, 0, 1, 0], [], []>} : vector<64x32xf32>, vector<8x32xf32>, vector<64x8xf32> -> vector<64x8xf32>
    %cst_50 = arith.constant 2.000000e+00 : f32
    %101 = vector.broadcast %cst_50 : f32 to vector<64x8xf32>
    %102 = arith.mulf %101, %100 : vector<64x8xf32>
    %103 = vector.broadcast %99 : vector<1x8xf32> to vector<64x8xf32>
    %104 = arith.subf %103, %102 : vector<64x8xf32>
    %cst_51 = arith.constant dense<0x7F800000> : vector<64xf32>
    %105 = vector.multi_reduction <minimumf>, %104, %cst_51 [1] : vector<64x8xf32> to vector<64xf32>
    %106 = vector.shape_cast %105 : vector<64xf32> to vector<64x1xf32>
    %107 = vector.broadcast %106 : vector<64x1xf32> to vector<64x8xf32>
    %108 = arith.cmpf oeq, %104, %107 : vector<64x8xf32>
    %c8_i32_52 = arith.constant 8 : i32
    %109 = vector.shape_cast %4 : vector<1x8xi32> to vector<1x8xi32>
    %110 = vector.broadcast %109 : vector<1x8xi32> to vector<64x8xi32>
    %111 = vector.broadcast %c8_i32_52 : i32 to vector<64x8xi32>
    %112 = arith.select %108, %110, %111 : vector<64x8xi1>, vector<64x8xi32>
    %cst_53 = arith.constant dense<2147483647> : vector<64xi32>
    %113 = vector.multi_reduction <minsi>, %112, %cst_53 [1] : vector<64x8xi32> to vector<64xi32>
    %114 = vector.shape_cast %113 : vector<64xi32> to vector<64x1xi32>
    %115 = vector.broadcast %4 : vector<1x8xi32> to vector<64x8xi32>
    %116 = vector.broadcast %114 : vector<64x1xi32> to vector<64x8xi32>
    %117 = arith.cmpi eq, %115, %116 : vector<64x8xi32>
    %118 = vector.broadcast %6 : vector<64x1xi1> to vector<64x8xi1>
    %119 = arith.andi %117, %118 : vector<64x8xi1>
    %cst_54 = arith.constant 1.000000e+00 : f32
    %cst_55 = arith.constant 0.000000e+00 : f32
    %120 = vector.broadcast %cst_54 : f32 to vector<64x8xf32>
    %121 = vector.broadcast %cst_55 : f32 to vector<64x8xf32>
    %122 = arith.select %119, %120, %121 : vector<64x8xi1>, vector<64x8xf32>
    %cst_56 = arith.constant dense<0.000000e+00> : vector<8x32xf32>
    %123 = tpu.matmul %122, %0, %cst_56 {dimension_numbers = #tpu.dot_dimension_numbers<[0], [0], [1], [1], [0, 1, 1, 1], [], []>} : vector<64x8xf32>, vector<64x32xf32>, vector<8x32xf32> -> vector<8x32xf32>
    %cst_57 = arith.constant dense<0.000000e+00> : vector<8x1xf32>
    %124 = tpu.matmul %122, %7, %cst_57 {dimension_numbers = #tpu.dot_dimension_numbers<[0], [0], [1], [1], [0, 1, 1, 1], [], []>} : vector<64x8xf32>, vector<64x1xf32>, vector<8x1xf32> -> vector<8x1xf32>
    %125 = vector.broadcast %124 : vector<8x1xf32> to vector<8x32xf32>
    %126 = arith.divf %123, %125 : vector<8x32xf32>
    %127 = arith.cmpf one, %126, %126 : vector<8x32xf32>
    %cst_58 = arith.constant 1.000000e+00 : f32
    %cst_59 = arith.constant 0.000000e+00 : f32
    %128 = vector.broadcast %cst_58 : f32 to vector<8x32xf32>
    %129 = vector.broadcast %cst_59 : f32 to vector<8x32xf32>
    %130 = arith.select %127, %128, %129 : vector<8x32xi1>, vector<8x32xf32>
    %cst_60 = arith.constant dense<0xFF800000> : vector<8xf32>
    %131 = vector.multi_reduction <maximumf>, %130, %cst_60 [1] : vector<8x32xf32> to vector<8xf32>
    %cst_61 = arith.constant 0.000000e+00 : f32
    %132 = vector.broadcast %cst_61 : f32 to vector<8xf32>
    %133 = arith.cmpf ogt, %131, %132 : vector<8xf32>
    %134 = vector.shape_cast %133 : vector<8xi1> to vector<8x1xi1>
    %c2 = arith.constant 2 : index
    %c0_62 = arith.constant 0 : index
    %c0_63 = arith.constant 0 : index
    %135 = vector.load %arg3[%c2, %c0_62, %c0_63] : memref<3x8x32xf32, #tpu.memory_space<vmem>>, vector<1x8x32xf32>
    %136 = vector.shape_cast %135 : vector<1x8x32xf32> to vector<8x32xf32>
    %137 = vector.shape_cast %134 : vector<8x1xi1> to vector<8x1xi1>
    %138 = vector.broadcast %137 : vector<8x1xi1> to vector<8x32xi1>
    %139 = arith.select %138, %136, %126 : vector<8x32xi1>, vector<8x32xf32>
    %c0_64 = arith.constant 0 : index
    %c0_65 = arith.constant 0 : index
    %140 = vector.load %arg7[%c0_64, %c0_65] : memref<8x32xf32, #tpu.memory_space<vmem>>, vector<8x32xf32>
    tpu.vector_store %arg7[%c0_64, %c0_65], %139 {strides = array<i32>} : memref<8x32xf32, #tpu.memory_space<vmem>>, vector<8x32xf32>,
    %c0_66 = arith.constant 0 : index
    %c0_67 = arith.constant 0 : index
    %141 = vector.load %arg5[%c0_66, %c0_67] : memref<64x1xi32, #tpu.memory_space<vmem>>, vector<64x1xi32>
    tpu.vector_store %arg5[%c0_66, %c0_67], %114 {strides = array<i32>} : memref<64x1xi32, #tpu.memory_space<vmem>>, vector<64x1xi32>,
    %c0_68 = arith.constant 0 : index
    %c0_69 = arith.constant 0 : index
    %142 = vector.load %arg7[%c0_68, %c0_69] : memref<8x32xf32, #tpu.memory_space<vmem>>, vector<8x32xf32>
    %cst_70 = arith.constant dense<0.000000e+00> : vector<64x8xf32>
    %143 = tpu.matmul %0, %142, %cst_70 {dimension_numbers = #tpu.dot_dimension_numbers<[1], [1], [0], [0], [0, 0, 1, 0], [], []>} : vector<64x32xf32>, vector<8x32xf32>, vector<64x8xf32> -> vector<64x8xf32>
    %144 = arith.mulf %0, %0 : vector<64x32xf32>
    %cst_71 = arith.constant dense<0.000000e+00> : vector<64xf32>
    %145 = vector.multi_reduction <add>, %144, %cst_71 [1] : vector<64x32xf32> to vector<64xf32>
    %146 = vector.shape_cast %145 : vector<64xf32> to vector<64x1xf32>
    %cst_72 = arith.constant 2.000000e+00 : f32
    %147 = vector.broadcast %cst_72 : f32 to vector<64x8xf32>
    %148 = arith.mulf %147, %143 : vector<64x8xf32>
    %149 = vector.broadcast %146 : vector<64x1xf32> to vector<64x8xf32>
    %150 = arith.subf %149, %148 : vector<64x8xf32>
    %cst_73 = arith.constant 0x7F800000 : f32
    %151 = vector.shape_cast %6 : vector<64x1xi1> to vector<64x1xi1>
    %152 = vector.broadcast %151 : vector<64x1xi1> to vector<64x8xi1>
    %153 = vector.broadcast %cst_73 : f32 to vector<64x8xf32>
    %154 = arith.select %152, %150, %153 : vector<64x8xi1>, vector<64x8xf32>
    %cst_74 = arith.constant dense<0x7F800000> : vector<8xf32>
    %155 = vector.multi_reduction <minimumf>, %154, %cst_74 [0] : vector<64x8xf32> to vector<8xf32>
    %156 = vector.shape_cast %155 : vector<8xf32> to vector<1x8xf32>
    %157 = vector.broadcast %156 : vector<1x8xf32> to vector<64x8xf32>
    %158 = arith.cmpf oeq, %154, %157 : vector<64x8xf32>
    %c64_i32_75 = arith.constant 64 : i32
    %159 = vector.shape_cast %3 : vector<64x1xi32> to vector<64x1xi32>
    %160 = vector.broadcast %159 : vector<64x1xi32> to vector<64x8xi32>
    %161 = vector.broadcast %c64_i32_75 : i32 to vector<64x8xi32>
    %162 = arith.select %158, %160, %161 : vector<64x8xi1>, vector<64x8xi32>
    %cst_76 = arith.constant dense<2147483647> : vector<8xi32>
    %163 = vector.multi_reduction <minsi>, %162, %cst_76 [0] : vector<64x8xi32> to vector<8xi32>
    %164 = vector.shape_cast %163 : vector<8xi32> to vector<1x8xi32>
    %c0_77 = arith.constant 0 : index
    %c0_78 = arith.constant 0 : index
    %165 = vector.load %arg6[%c0_77, %c0_78] : memref<1x8xi32, #tpu.memory_space<vmem>>, vector<1x8xi32>
    tpu.vector_store %arg6[%c0_77, %c0_78], %164 {strides = array<i32>} : memref<1x8xi32, #tpu.memory_space<vmem>>, vector<1x8xi32>,
    %c0_79 = arith.constant 0 : index
    %c0_80 = arith.constant 0 : index
    %166 = vector.load %arg4[%c0_79, %c0_80] : memref<8x32xf32, #tpu.memory_space<vmem>>, vector<8x32xf32>
    tpu.vector_store %arg4[%c0_79, %c0_80], %142 {strides = array<i32>} : memref<8x32xf32, #tpu.memory_space<vmem>>, vector<8x32xf32>,
    return
  }
  func.func @transform_0(%arg0: i32) -> (i32, i32) {
    %c0_i32 = arith.constant 0 : i32
    %c0_i32_0 = arith.constant 0 : i32
    %c0_i32_1 = arith.constant 0 : i32
    return %c0_i32, %c0_i32_0 : i32, i32
  }
  func.func @transform_1(%arg0: i32) -> (i32, i32) {
    %c0_i32 = arith.constant 0 : i32
    %c0_i32_0 = arith.constant 0 : i32
    %c0_i32_1 = arith.constant 0 : i32
    return %c0_i32, %c0_i32_0 : i32, i32
  }
  func.func @transform_2(%arg0: i32) -> (i32, i32, i32) {
    %c0_i32 = arith.constant 0 : i32
    %c0_i32_0 = arith.constant 0 : i32
    %c0_i32_1 = arith.constant 0 : i32
    %c0_i32_2 = arith.constant 0 : i32
    return %c0_i32, %c0_i32_0, %c0_i32_1 : i32, i32, i32
  }
  func.func @transform_3(%arg0: i32) -> (i32, i32) {
    %c0_i32 = arith.constant 0 : i32
    %c0_i32_0 = arith.constant 0 : i32
    %c0_i32_1 = arith.constant 0 : i32
    return %c0_i32, %c0_i32_0 : i32, i32
  }
  func.func @transform_4(%arg0: i32) -> (i32, i32) {
    %c0_i32 = arith.constant 0 : i32
    %c0_i32_0 = arith.constant 0 : i32
    %c0_i32_1 = arith.constant 0 : i32
    return %c0_i32, %c0_i32_0 : i32, i32
  }
  func.func @transform_5(%arg0: i32) -> (i32, i32) {
    %c0_i32 = arith.constant 0 : i32
    %c0_i32_0 = arith.constant 0 : i32
    %c0_i32_1 = arith.constant 0 : i32
    return %c0_i32, %c0_i32_0 : i32, i32
  }
}

</mosaic_0001>

<bundles_post_ra>
// kernel: kmeans_layer_forward.1
= control target key start
LH: loop header
LB: loop body
LE: loop exit
PB: predicated region body
PF: predicated region fallthrough
CT: control target
= control target key end

     0   :  { %vm27_vm0 = vcmask 261120   ;;  %v2478_v2 = vmov 0.0   ;;  %vm2479_vm1 = vmmov 0   ;;  %s3052_s0 = inlined_call_operand.vmem [shape: f32[64,32], index: 0, kind: input, shape index: {}]   ;;  %s3053_s1 = inlined_call_operand.vmem [shape: f32[8,32], index: 1, kind: input, shape index: {}]   ;;  %s3054_s2 = inlined_call_operand.vmem [shape: f32[3,8,32], index: 2, kind: input, shape index: {}]   ;;  %s3055_s3 = inlined_call_operand.hbm [shape: f32[8,32], index: 3, kind: output, shape index: {0}]   ;;  %s3056_s4 = inlined_call_operand.vmem [shape: s32[64,1], index: 4, kind: output, shape index: {1}]   ;;  %s3057_s5 = inlined_call_operand.vmem [shape: s32[1,8], index: 5, kind: output, shape index: {2}]  }
   0x1   :  { %v26_v0 = vld [vmem:[%s3053_s1] sm:$0xff]  ;;  %2248 = vmatprep.subr.mxu0 %v2478_v2  ;;  %2250 = vmatprep.mubr.msk.f32.mxu0 %vm2479_vm1, %v2478_v2 }
   0x2   :  { %v2519_v1 = vld [vmem:[%s3052_s0] sm:$0xff]  ;;  %28 = vst.msk [vmem:[#allocation2] sm:$0xff] %vm27_vm0, %v26_v0 }
   0x3   :  { %2255 = vmatprep.mubr.msk.f32.mxu1 %vm27_vm0, %v2519_v1 }
   0x4   :  { %11 = vsyncpa [#allocation4], 0  ;;  %v2532_v5 = vld [vmem:[%s3052_s0 + $0x8] sm:$0xff]  ;;  %v2538_v6 = vld [vmem:[%s3052_s0 + $0x10] sm:$0xff]  ;;  %v2480_v7 = vmov 1.0   ;;  %v29_v13 = vlaneseq  ;;  %vm278_vm2 = vcmask 64512  }
   0x5   :  { %v2551_v8 = vld [vmem:[%s3052_s0 + $0x18] sm:$0xff]  ;;  %v2561_v10 = vld [vmem:[%s3052_s0 + $0x20] sm:$0xff]  ;;  %v2568_v11 = vld [vmem:[%s3052_s0 + $0x30] sm:$0xff] }
   0x6   :  { %v2556_v9 = vld [vmem:[%s3052_s0 + $0x38] sm:$0xff]  ;;  %v2580_v12 = vld [vmem:[%s3052_s0 + $0x28] sm:$0xff]  ;;  %v2618_v14 = vshrl.u32 %v29_v13, 7  ;;  %v2632_v51 = vand.u32 127, %v29_v13 }
   0x8   :  { %v2621_v15 = vsub.s32 0, %v2618_v14 }
   0x9   :  { %v48_v3 = vld [vmem:[#allocation2] sm:$0xff] }
   0xa   :  { %2253 = vmatprep.subr.msk.mxu1 %vm27_vm0, %v48_v3  ;;  %v49_v4 = vmul.f32 %v48_v3, %v48_v3 }
   0xb   :  { %2254 = vmatpush3.xpose.msk.msra.mxu1 %vm27_vm0, %v48_v3 }
   0xc   :  { %2249 = vmatpush3.xpose.msk.msra.mxu0 %vm27_vm0, %v49_v4  ;;  %2286 = vmatprep.subr.mxu1 %v2478_v2 }
   0xd   :  { %2267 = vmatprep.subr.mxu0 %v2478_v2 }
   0xe   :  { %2256 = vmatmul.mubr.msk.f32.vlgmr.msra.gmra.mxu1 %vm27_vm0, %v2532_v5 }
   0xf   :  { %2251 = vmatmul.mubr.msk.f32.vlgmr.msra.gmra.mxu0 %vm27_vm0, %v2480_v7  ;;  %2258 = vmatprep.mubr.msk.f32.mxu1 %vm27_vm0, %v2538_v6 }
  0x10   :  { %2268 = vmatpush3.msra.mxu0 %v2556_v9  ;;  %2287 = vmatpush3.msra.mxu1 %v2480_v7 }
  0x11   :  { %2269 = vmatprep.subr.mxu0 %v2478_v2  ;;  %2288 = vmatprep.subr.mxu1 %v2478_v2 }
  0x12   :  { %2259 = vmatmul.mubr.msk.f32.gmra.mxu1 %vm27_vm0, %v2551_v8  ;;  %2270 = vmatpush3.msra.mxu0 %v2568_v11 }
  0x13   :  { %2261 = vmatprep.mubr.msk.f32.mxu1 %vm27_vm0, %v2561_v10  ;;  %2289 = vmatpush3.msra.mxu1 %v2480_v7 }
  0x14   :  { %2271 = vmatprep.subr.mxu0 %v2478_v2  ;;  %2290 = vmatprep.subr.mxu1 %v2478_v2 }
  0x15   :  { %2272 = vmatpush3.msra.mxu0 %v2580_v12  ;;  %2291 = vmatpush3.msra.mxu1 %v2480_v7 }
  0x16   :  { %2262 = vmatmul.mubr.msk.f32.gmra.mxu1 %vm27_vm0, %v2580_v12  ;;  %2273 = vmatprep.subr.mxu0 %v2478_v2 }
  0x17   :  { %2264 = vmatprep.mubr.msk.f32.mxu1 %vm27_vm0, %v2568_v11  ;;  %2292 = vmatprep.subr.mxu1 %v2478_v2 }
  0x18   :  { %2274 = vmatpush3.msra.mxu0 %v2561_v10  ;;  %2293 = vmatpush3.msra.mxu1 %v2480_v7 }
  0x19   :  { %2275 = vmatprep.subr.mxu0 %v2478_v2  ;;  %2294 = vmatprep.subr.mxu1 %v2478_v2 }
  0x1a   :  { %2265 = vmatmul.mubr.msk.f32.gmra.mxu1 %vm27_vm0, %v2556_v9  ;;  %2276 = vmatpush3.msra.mxu0 %v2551_v8 }
  0x1b   :  { %2295 = vmatpush3.msra.mxu1 %v2480_v7  ;;  %2277 = vmatprep.subr.mxu0 %v2478_v2 }
  0x1c   :  { %2296 = vmatprep.subr.mxu1 %v2478_v2  ;;  %2278 = vmatpush3.msra.mxu0 %v2538_v6 }
  0x1d   :  { %2297 = vmatpush3.msra.mxu1 %v2480_v7  ;;  %2279 = vmatprep.subr.mxu0 %v2478_v2 }
  0x1e   :  { %2298 = vmatprep.subr.mxu1 %v2478_v2  ;;  %2280 = vmatpush3.msra.mxu0 %v2532_v5 }
  0x1f   :  { %2299 = vmatpush3.msra.mxu1 %v2480_v7  ;;  %2281 = vmatprep.subr.mxu0 %v2478_v2 }
  0x20   :  { %2300 = vmatprep.subr.mxu1 %v2478_v2  ;;  %2282 = vmatpush3.msra.mxu0 %v2519_v1 }
  0x21   :  { %2283 = vmatprep.mubr.msk.f32.mxu0 %vm2479_vm1, %v2478_v2  ;;  %2301 = vmatpush3.msra.mxu1 %v2480_v7 }
  0x22   :  { %2302 = vmatprep.mubr.msk.f32.mxu1 %vm2479_vm1, %v2478_v2  ;;  %2305 = vmatprep.subr.mxu0 %v2478_v2 }
  0xce   :  { %v2257_v16 = vpop.f32.mrf.mxu1 }
  0xcf   :  { %v122_v17 = vpop.f32.mrf.mxu0  ;;  %v259_v20 = vmul.f32 2.0, %v2257_v16 }
  0xd0   :  { %v269_v18 = vrot.slane %v122_v17, %v2621_v15  ;;  %v219_v19 = vpop.f32.mrf.mxu1 }
  0xd1   :  { %v258_v21 = vmul.f32 2.0, %v219_v19  ;;  %v2252_v22 = vpop.f32.mrf.mxu0 }
  0xd2   :  { %v2260_v23 = vpop.f32.mrf.mxu1  ;;  %v271_v29 = vsub.f32 %v269_v18, %v259_v20 }
  0xd3   :  { %v270_v24 = vsub.f32 %v269_v18, %v258_v21  ;;  %v261_v25 = vmul.f32 2.0, %v2260_v23 }
  0xd4   :  { %v229_v26 = vpop.f32.mrf.mxu1  ;;  %v282_v36 = vsel %vm278_vm2, %v271_v29, inf }
  0xd5   :  { %v260_v27 = vmul.f32 2.0, %v229_v26  ;;  %v279_v28 = vsel %vm278_vm2, %v270_v24, inf  ;;  %v273_v33 = vsub.f32 %v269_v18, %v261_v25 }
  0xd6   :  { %280 = vmin.xlane.f32.xlu0 %v279_v28  ;;  %v2263_v30 = vpop.f32.mrf.mxu1 }
  0xd7   :  { %v272_v31 = vsub.f32 %v269_v18, %v260_v27  ;;  %v263_v34 = vmul.f32 2.0, %v2263_v30  ;;  %v288_v41 = vsel %vm278_vm2, %v273_v33, inf }
  0xd8   :  { %v239_v32 = vpop.f32.mrf.mxu1 }
  0xd9   :  { %v262_v35 = vmul.f32 2.0, %v239_v32  ;;  %v285_v37 = vsel %vm278_vm2, %v272_v31, inf  ;;  %v275_v45 = vsub.f32 %v269_v18, %v263_v34 }
  0xda   :  { %283 = vmin.xlane.f32.xlu0 %v282_v36  ;;  %286 = vmin.xlane.f32.xlu1 %v285_v37  ;;  %v2266_v38 = vpop.f32.mrf.mxu1 }
  0xdb   :  { %v274_v39 = vsub.f32 %v269_v18, %v262_v35  ;;  %v265_v42 = vmul.f32 2.0, %v2266_v38  ;;  %v294_v47 = vsel %vm278_vm2, %v275_v45, inf }
  0xdc   :  { %v249_v40 = vpop.f32.mrf.mxu1 }
  0xdd   :  { %v264_v43 = vmul.f32 2.0, %v249_v40  ;;  %v291_v44 = vsel %vm278_vm2, %v274_v39, inf  ;;  %v277_v49 = vsub.f32 %v269_v18, %v265_v42 }
  0xde   :  { %289 = vmin.xlane.f32.xlu1 %v288_v41  ;;  %292 = vmin.xlane.f32.xlu0 %v291_v44 }
  0xdf   :  { %v276_v46 = vsub.f32 %v269_v18, %v264_v43  ;;  %v300_v50 = vsel %vm278_vm2, %v277_v49, inf }
  0xe1   :  { %v297_v48 = vsel %vm278_vm2, %v276_v46, inf }
  0xe2   :  { %295 = vmin.xlane.f32.xlu1 %v294_v47  ;;  %298 = vmin.xlane.f32.xlu0 %v297_v48 }
  0xe6   :  { %301 = vmin.xlane.f32.xlu1 %v300_v50 }
 0x15f   :  { %v281_v52 = vpop.xlane.xlu0 %280 }
 0x160   :  { %vm303_vm3 = vcmp.eq.f32.partialorder %v270_v24, %v281_v52 }
 0x161   :  { %v311_v53 = vsel %vm303_vm3, %v2632_v51, 8 }
 0x162   :  { %v319_v54 = vsel %vm278_vm2, %v311_v53, 2147483647 }
 0x163   :  { %v284_v55 = vpop.xlane.xlu0 %283  ;;  %v287_v56 = vpop.xlane.xlu1 %286  ;;  %v321_v57 = vshra.s32 %v319_v54, 16  ;;  %v320_v40 = vand.u32 65535, %v319_v54 }
 0x164   :  { %vm304_vm4 = vcmp.eq.f32.partialorder %v271_v29, %v284_v55  ;;  %vm305_vm5 = vcmp.eq.f32.partialorder %v272_v31, %v287_v56 }
 0x165   :  { %v312_v58 = vsel %vm304_vm4, %v2632_v51, 8  ;;  %v313_v59 = vsel %vm305_vm5, %v2632_v51, 8  ;;  %v323_v60 = vcvt.s32.f32 %v321_v57  ;;  %v322_v42 = vcvt.s32.f32 %v320_v40 }
 0x166   :  { %v334_v61 = vsel %vm278_vm2, %v312_v58, 2147483647  ;;  %v349_v62 = vsel %vm278_vm2, %v313_v59, 2147483647 }
 0x167   :  { %v290_v63 = vpop.xlane.xlu1 %289  ;;  %v293_v0 = vpop.xlane.xlu0 %292  ;;  %324 = vmin.xlane.f32.xlu0 %v323_v60  ;;  %v336_v3 = vshra.s32 %v334_v61, 16  ;;  %v351_v4 = vshra.s32 %v349_v62, 16  ;;  %v335_v43 = vand.u32 65535, %v334_v61  ;;  %v350_v44 = vand.u32 65535, %v349_v62 }
 0x168   :  { %vm306_vm6 = vcmp.eq.f32.partialorder %v273_v33, %v290_v63  ;;  %vm307_vm7 = vcmp.eq.f32.partialorder %v274_v39, %v293_v0 }
 0x169   :  { %v314_v13 = vsel %vm306_vm6, %v2632_v51, 8  ;;  %v315_v16 = vsel %vm307_vm7, %v2632_v51, 8  ;;  %v338_v17 = vcvt.s32.f32 %v336_v3  ;;  %v353_v18 = vcvt.s32.f32 %v351_v4 }
 0x16a   :  { %v379_v19 = vsel %vm278_vm2, %v315_v16, 2147483647  ;;  %v364_v20 = vsel %vm278_vm2, %v314_v13, 2147483647  ;;  %v337_v48 = vcvt.s32.f32 %v335_v43 }
 0x16b   :  { %v296_v21 = vpop.xlane.xlu1 %295  ;;  %339 = vmin.xlane.f32.xlu1 %v338_v17  ;;  %354 = vmin.xlane.f32.xlu0 %v353_v18  ;;  %v299_v22 = vpop.xlane.xlu0 %298  ;;  %v366_v23 = vshra.s32 %v364_v20, 16  ;;  %v381_v24 = vshra.s32 %v379_v19, 16  ;;  %v365_v50 = vand.u32 65535, %v364_v20  ;;  %v380_v52 = vand.u32 65535, %v379_v19 }
 0x16c   :  { %vm308_vm8 = vcmp.eq.f32.partialorder %v275_v45, %v296_v21  ;;  %vm309_vm9 = vcmp.eq.f32.partialorder %v276_v46, %v299_v22 }
 0x16d   :  { %v316_v25 = vsel %vm308_vm8, %v2632_v51, 8  ;;  %v317_v26 = vsel %vm309_vm9, %v2632_v51, 8  ;;  %v368_v27 = vcvt.s32.f32 %v366_v23  ;;  %v383_v28 = vcvt.s32.f32 %v381_v24 }
 0x16e   :  { %v409_v29 = vsel %vm278_vm2, %v317_v26, 2147483647  ;;  %v394_v30 = vsel %vm278_vm2, %v316_v25, 2147483647  ;;  %v367_v57 = vcvt.s32.f32 %v365_v50  ;;  %v382_v58 = vcvt.s32.f32 %v380_v52 }
 0x16f   :  { %369 = vmin.xlane.f32.xlu1 %v368_v27  ;;  %v302_v31 = vpop.xlane.xlu1 %301  ;;  %384 = vmin.xlane.f32.xlu0 %v383_v28  ;;  %v396_v32 = vshra.s32 %v394_v30, 16  ;;  %v411_v33 = vshra.s32 %v409_v29, 16  ;;  %v395_v59 = vand.u32 65535, %v394_v30 }
 0x170   :  { %vm310_vm10 = vcmp.eq.f32.partialorder %v277_v49, %v302_v31  ;;  %v352_v49 = vcvt.s32.f32 %v350_v44 }
 0x171   :  { %v318_v34 = vsel %vm310_vm10, %v2632_v51, 8  ;;  %v398_v35 = vcvt.s32.f32 %v396_v32  ;;  %v413_v36 = vcvt.s32.f32 %v411_v33  ;;  %v397_v3 = vcvt.s32.f32 %v395_v59 }
 0x172   :  { %v424_v37 = vsel %vm278_vm2, %v318_v34, 2147483647 }
 0x173   :  { %399 = vmin.xlane.f32.xlu1 %v398_v35  ;;  %414 = vmin.xlane.f32.xlu0 %v413_v36  ;;  %v426_v38 = vshra.s32 %v424_v37, 16  ;;  %v425_v13 = vand.u32 65535, %v424_v37 }
 0x175   :  { %v428_v39 = vcvt.s32.f32 %v426_v38  ;;  %v427_v19 = vcvt.s32.f32 %v425_v13 }
 0x177   :  { %429 = vmin.xlane.f32.xlu1 %v428_v39 }
 0x1f0   :  { %v325_v41 = vpop.xlane.xlu0 %324 }
 0x1f1   :  { %vm326_vm11 = vcmp.eq.f32.partialorder %v323_v60, %v325_v41  ;;  %v410_v60 = vand.u32 65535, %v409_v29  ;;  %v331_v21 = vcvt.f32.s32 %v325_v41 }
 0x1f2   :  { %v327_v45 = vsel %vm326_vm11, %v322_v42, inf }
 0x1f3   :  { %328 = vmin.xlane.f32.xlu0 %v327_v45  ;;  %v412_v4 = vcvt.s32.f32 %v410_v60  ;;  %v332_v25 = vshll.u32 %v331_v21, 16 }
 0x1f4   :  { %v340_v46 = vpop.xlane.xlu1 %339  ;;  %v355_v47 = vpop.xlane.xlu0 %354 }
 0x1f5   :  { %vm341_vm12 = vcmp.eq.f32.partialorder %v338_v17, %v340_v46  ;;  %vm356_vm13 = vcmp.eq.f32.partialorder %v353_v18, %v355_v47  ;;  %v346_v22 = vcvt.f32.s32 %v340_v46  ;;  %v361_v23 = vcvt.f32.s32 %v355_v47 }
 0x1f6   :  { %v342_v53 = vsel %vm341_vm12, %v337_v48, inf  ;;  %v357_v55 = vsel %vm356_vm13, %v352_v49, inf }
 0x1f7   :  { %343 = vmin.xlane.f32.xlu1 %v342_v53  ;;  %358 = vmin.xlane.f32.xlu0 %v357_v55  ;;  %v362_v29 = vshll.u32 %v361_v23, 16 }
 0x1f8   :  { %v370_v54 = vpop.xlane.xlu1 %369  ;;  %v385_v56 = vpop.xlane.xlu0 %384 }
 0x1f9   :  { %vm371_vm14 = vcmp.eq.f32.partialorder %v368_v27, %v370_v54  ;;  %vm386_vm15 = vcmp.eq.f32.partialorder %v383_v28, %v385_v56  ;;  %v347_v28 = vshll.u32 %v346_v22, 16  ;;  %v376_v32 = vcvt.f32.s32 %v370_v54 }
 0x1fa   :  { %v372_v61 = vsel %vm371_vm14, %v367_v57, inf  ;;  %v387_v62 = vsel %vm386_vm15, %v382_v58, inf  ;;  %v391_v42 = vcvt.f32.s32 %v385_v56  ;;  %vm511_vm14 = vcmask 523264  }
 0x1fb   :  { %373 = vmin.xlane.f32.xlu1 %v372_v61  ;;  %388 = vmin.xlane.f32.xlu0 %v387_v62  ;;  %v377_v41 = vshll.u32 %v376_v32, 16 }
 0x1fc   :  { %v400_v63 = vpop.xlane.xlu1 %399  ;;  %v2650_v0 = vpop.xlane.xlu0 %414  ;;  %v392_v48 = vshll.u32 %v391_v42, 16 }
 0x1fd   :  { %vm401_vm3 = vcmp.eq.f32.partialorder %v398_v35, %v400_v63  ;;  %vm416_vm4 = vcmp.eq.f32.partialorder %v413_v36, %v2650_v0  ;;  %v2481_v35 = vmov 0   ;;  %v406_v49 = vcvt.f32.s32 %v400_v63 }
 0x1fe   :  { %v402_v16 = vsel %vm401_vm3, %v397_v3, inf  ;;  %v417_v17 = vsel %vm416_vm4, %v412_v4, inf  ;;  %2440 = vset.pattern.permute.xlu1 %v2481_v35  ;;  %v421_v56 = vcvt.f32.s32 %v2650_v0 }
 0x1ff   :  { %403 = vmin.xlane.f32.xlu1 %v402_v16  ;;  %418 = vmin.xlane.f32.xlu0 %v417_v17  ;;  %v407_v54 = vshll.u32 %v406_v49, 16 }
 0x200   :  { %v430_v18 = vpop.xlane.xlu1 %429  ;;  %v422_v61 = vshll.u32 %v421_v56, 16 }
 0x201   :  { %vm431_vm5 = vcmp.eq.f32.partialorder %v428_v39, %v430_v18  ;;  %v436_v62 = vcvt.f32.s32 %v430_v18 }
 0x202   :  { %v432_v20 = vsel %vm431_vm5, %v427_v19, inf }
 0x203   :  { %433 = vmin.xlane.f32.xlu1 %v432_v20  ;;  %v437_v13 = vshll.u32 %v436_v62, 16 }
 0x27c   :  { %v329_v24 = vpop.xlane.xlu0 %328 }
 0x27d   :  { %v330_v26 = vcvt.f32.s32 %v329_v24 }
 0x27f   :  { %v333_v27 = vadd.s32 %v332_v25, %v330_v26 }
 0x280   :  { %v344_v30 = vpop.xlane.xlu1 %343  ;;  %v359_v31 = vpop.xlane.xlu0 %358 }
 0x281   :  { %v345_v33 = vcvt.f32.s32 %v344_v30  ;;  %v360_v34 = vcvt.f32.s32 %v359_v31  ;;  %vm439_vm6 = vcmp.eq.s32.totalorder %v2632_v51, %v333_v27 }
 0x282   :  { %v471_v36 = vsel %vm439_vm6, 1.0, %v2478_v2 }
 0x283   :  { %v348_v37 = vadd.s32 %v347_v28, %v345_v33  ;;  %v363_v38 = vadd.s32 %v362_v29, %v360_v34  ;;  %479 = vxpose.xlu0.b32.start [1/8] (short) (narrow) %v471_v36, 8  ;;  %v668_v29 = vld [vmem:[%s3054_s2] sm:$0xff] }
 0x284   :  { %v374_v39 = vpop.xlane.xlu1 %373  ;;  %v389_v40 = vpop.xlane.xlu0 %388 }
 0x285   :  { %v375_v43 = vcvt.f32.s32 %v374_v39  ;;  %vm440_vm7 = vcmp.eq.s32.totalorder %v2632_v51, %v348_v37  ;;  %v390_v46 = vcvt.f32.s32 %v389_v40  ;;  %vm441_vm8 = vcmp.eq.s32.totalorder %v2632_v51, %v363_v38 }
 0x286   :  { %v472_v44 = vsel %vm440_vm7, 1.0, %v2478_v2  ;;  %v473_v50 = vsel %vm441_vm8, 1.0, %v2478_v2 }
 0x287   :  { %v378_v45 = vadd.s32 %v377_v41, %v375_v43  ;;  %480 = vxpose.xlu0.b32.cont [2/8] (short) (narrow) %v472_v44, 8  ;;  %v393_v52 = vadd.s32 %v392_v48, %v390_v46 }
 0x288   :  { %v404_v47 = vpop.xlane.xlu1 %403  ;;  %v419_v55 = vpop.xlane.xlu0 %418 }
 0x289   :  { %v405_v53 = vcvt.f32.s32 %v404_v47  ;;  %vm442_vm9 = vcmp.eq.s32.totalorder %v2632_v51, %v378_v45  ;;  %v420_v59 = vcvt.f32.s32 %v419_v55  ;;  %vm443_vm10 = vcmp.eq.s32.totalorder %v2632_v51, %v393_v52 }
 0x28a   :  { %v474_v57 = vsel %vm442_vm9, 1.0, %v2478_v2  ;;  %v475_v63 = vsel %vm443_vm10, 1.0, %v2478_v2 }
 0x28b   :  { %481 = vxpose.xlu0.b32.cont [3/8] (short) (narrow) %v473_v50, 8  ;;  %v408_v58 = vadd.s32 %v407_v54, %v405_v53  ;;  %v423_v3 = vadd.s32 %v422_v61, %v420_v59 }
 0x28c   :  { %v434_v60 = vpop.xlane.xlu1 %433 }
 0x28d   :  { %v435_v4 = vcvt.f32.s32 %v434_v60  ;;  %vm444_vm11 = vcmp.eq.s32.totalorder %v2632_v51, %v408_v58  ;;  %vm445_vm12 = vcmp.eq.s32.totalorder %v2632_v51, %v423_v3 }
 0x28e   :  { %v476_v0 = vsel %vm444_vm11, 1.0, %v2478_v2  ;;  %v477_v17 = vsel %vm445_vm12, 1.0, %v2478_v2 }
 0x28f   :  { %482 = vxpose.xlu0.b32.cont [4/8] (short) (narrow) %v474_v57, 8  ;;  %v438_v16 = vadd.s32 %v437_v13, %v435_v4 }
 0x291   :  { %vm446_vm13 = vcmp.eq.s32.totalorder %v2632_v51, %v438_v16 }
 0x292   :  { %v478_v18 = vsel %vm446_vm13, 1.0, %v2478_v2 }
 0x293   :  { %483 = vxpose.xlu0.b32.cont [5/8] (short) (narrow) %v475_v63, 8 }
 0x297   :  { %484 = vxpose.xlu0.b32.cont [6/8] (short) (narrow) %v476_v0, 8 }
 0x29b   :  { %485 = vxpose.xlu0.b32.cont [7/8] (short) (narrow) %v477_v17, 8 }
 0x29f   :  { %486 = vxpose.xlu0.b32.end [8/8] (short) (narrow) %v478_v18, 8 }
 0x2ff   :  { %v495_v19 = vpop.trf.xlu0 }
 0x300   :  { %2284 = vmatmul.mubr.msk.f32.vlgmr.msra.gmra.mxu0 %vm511_vm14, %v495_v19  ;;  %2303 = vmatmul.mubr.msk.f32.vlgmr.msra.gmra.mxu1 %vm511_vm14, %v495_v19 }
 0x301   :  { %2312 = vmatprep.mubr.msk.f32.mxu1 %vm27_vm0, %v2519_v1  ;;  %2307 = vmatprep.mubr.msk.f32.mxu0 %vm2479_vm1, %v2478_v2 }
 0x3c0   :  { %v581_v20 = vpop.f32.mrf.mxu0  ;;  %v651_v21 = vpop.f32.mrf.mxu1 }
 0x3c1   :  { %657 = vperm.xlu1 %2440, %v651_v21  }
 0x3c2   :  { %v2285_v22 = vpop.f32.mrf.mxu0  ;;  %v2304_v23 = vpop.f32.mrf.mxu1 }
 0x43c   :  { %v658_v24 = vpop.permute.xlu1 %657 }
 0x43d   :  { %2442 = vrcp.f32 %v658_v24 }
 0x44a   :  { %v2443_v25 = vpop.eup %2442 }
 0x44b   :  { %v661_v26 = vmul.f32 %v2443_v25, %v581_v20 }
 0x44d   :  { %vm662_vm15 = vcmp.ne.f32.partialorder %v661_v26, %v661_v26 }
 0x44e   :  { %v663_v27 = vsel %vm662_vm15, 1.0, %v2478_v2 }
 0x44f   :  { %v664_v28 = vsel %vm27_vm0, %v663_v27, -inf }
 0x450   :  { %665 = vmax.xlane.f32.xlu1 %v664_v28 }
 0x4d9   :  { %v666_v30 = vpop.xlane.xlu1 %665 }
 0x4da   :  { %vm667_vm3 = vcmp.gt.f32.partialorder %v666_v30, 0.0 }
 0x4db   :  { %v671_v31 = vsel %vm667_vm3, %v668_v29, %v661_v26 }
 0x4dc   :  { %672 = vst.msk [vmem:[#allocation2] sm:$0xff] %vm27_vm0, %v671_v31 }
 0x4e3   :  { %v673_v32 = vld [vmem:[#allocation2] sm:$0xff] }
 0x4e4   :  { %v674_v33 = vmul.f32 %v673_v32, %v673_v32  ;;  %2310 = vmatprep.subr.msk.mxu1 %vm27_vm0, %v673_v32 }
 0x4e5   :  { %2311 = vmatpush3.xpose.msk.msra.mxu1 %vm27_vm0, %v673_v32 }
 0x4e6   :  { %2306 = vmatpush3.xpose.msk.msra.mxu0 %vm27_vm0, %v674_v33  ;;  %2343 = vmatprep.subr.mxu1 %v2478_v2 }
 0x4e7   :  { %2324 = vmatprep.subr.mxu0 %v2478_v2 }
 0x4e8   :  { %2313 = vmatmul.mubr.msk.f32.vlgmr.msra.gmra.mxu1 %vm27_vm0, %v2532_v5 }
 0x4e9   :  { %2308 = vmatmul.mubr.msk.f32.vlgmr.msra.gmra.mxu0 %vm27_vm0, %v2480_v7  ;;  %2315 = vmatprep.mubr.msk.f32.mxu1 %vm27_vm0, %v2538_v6 }
 0x4ea   :  { %2325 = vmatpush3.msra.mxu0 %v2556_v9  ;;  %2344 = vmatpush3.msra.mxu1 %v2480_v7 }
 0x4eb   :  { %2326 = vmatprep.subr.mxu0 %v2478_v2  ;;  %2345 = vmatprep.subr.mxu1 %v2478_v2 }
 0x4ec   :  { %2316 = vmatmul.mubr.msk.f32.gmra.mxu1 %vm27_vm0, %v2551_v8  ;;  %2327 = vmatpush3.msra.mxu0 %v2568_v11 }
 0x4ed   :  { %2318 = vmatprep.mubr.msk.f32.mxu1 %vm27_vm0, %v2561_v10  ;;  %2346 = vmatpush3.msra.mxu1 %v2480_v7 }
 0x4ee   :  { %2328 = vmatprep.subr.mxu0 %v2478_v2  ;;  %2347 = vmatprep.subr.mxu1 %v2478_v2 }
 0x4ef   :  { %2329 = vmatpush3.msra.mxu0 %v2580_v12  ;;  %2348 = vmatpush3.msra.mxu1 %v2480_v7 }
 0x4f0   :  { %2319 = vmatmul.mubr.msk.f32.gmra.mxu1 %vm27_vm0, %v2580_v12  ;;  %2330 = vmatprep.subr.mxu0 %v2478_v2 }
 0x4f1   :  { %2321 = vmatprep.mubr.msk.f32.mxu1 %vm27_vm0, %v2568_v11  ;;  %2349 = vmatprep.subr.mxu1 %v2478_v2 }
 0x4f2   :  { %2331 = vmatpush3.msra.mxu0 %v2561_v10  ;;  %2350 = vmatpush3.msra.mxu1 %v2480_v7 }
 0x4f3   :  { %2332 = vmatprep.subr.mxu0 %v2478_v2  ;;  %2351 = vmatprep.subr.mxu1 %v2478_v2 }
 0x4f4   :  { %2322 = vmatmul.mubr.msk.f32.gmra.mxu1 %vm27_vm0, %v2556_v9  ;;  %2333 = vmatpush3.msra.mxu0 %v2551_v8 }
 0x4f5   :  { %2352 = vmatpush3.msra.mxu1 %v2480_v7  ;;  %2334 = vmatprep.subr.mxu0 %v2478_v2 }
 0x4f6   :  { %2353 = vmatprep.subr.mxu1 %v2478_v2  ;;  %2335 = vmatpush3.msra.mxu0 %v2538_v6 }
 0x4f7   :  { %2354 = vmatpush3.msra.mxu1 %v2480_v7  ;;  %2336 = vmatprep.subr.mxu0 %v2478_v2 }
 0x4f8   :  { %2355 = vmatprep.subr.mxu1 %v2478_v2  ;;  %2337 = vmatpush3.msra.mxu0 %v2532_v5 }
 0x4f9   :  { %2356 = vmatpush3.msra.mxu1 %v2480_v7  ;;  %2338 = vmatprep.subr.mxu0 %v2478_v2 }
 0x4fa   :  { %2357 = vmatprep.subr.mxu1 %v2478_v2  ;;  %2339 = vmatpush3.msra.mxu0 %v2519_v1 }
 0x4fb   :  { %2340 = vmatprep.mubr.msk.f32.mxu0 %vm2479_vm1, %v2478_v2  ;;  %2358 = vmatpush3.msra.mxu1 %v2480_v7 }
 0x4fc   :  { %2359 = vmatprep.mubr.msk.f32.mxu1 %vm2479_vm1, %v2478_v2  ;;  %2362 = vmatprep.subr.mxu0 %v2478_v2 }
 0x5a8   :  { %v2314_v6 = vpop.f32.mrf.mxu1 }
 0x5a9   :  { %v857_v5 = vmul.f32 2.0, %v2314_v6  ;;  %v744_v8 = vpop.f32.mrf.mxu0 }
 0x5aa   :  { %v867_v9 = vrot.slane %v744_v8, %v2621_v15  ;;  %v817_v10 = vpop.f32.mrf.mxu1 }
 0x5ab   :  { %v856_v11 = vmul.f32 2.0, %v817_v10  ;;  %v2309_v12 = vpop.f32.mrf.mxu0 }
 0x5ac   :  { %v2317_v34 = vpop.f32.mrf.mxu1  ;;  %v869_v1 = vsub.f32 %v867_v9, %v857_v5 }
 0x5ad   :  { %v859_v36 = vmul.f32 2.0, %v2317_v34  ;;  %v868_v39 = vsub.f32 %v867_v9, %v856_v11 }
 0x5ae   :  { %v827_v37 = vpop.f32.mrf.mxu1  ;;  %v879_v38 = vsel %vm278_vm2, %v869_v1, inf }
 0x5af   :  { %880 = vmin.xlane.f32.xlu1 %v879_v38  ;;  %v858_v42 = vmul.f32 2.0, %v827_v37  ;;  %v876_v44 = vsel %vm278_vm2, %v868_v39, inf  ;;  %v871_v45 = vsub.f32 %v867_v9, %v859_v36 }
 0x5b0   :  { %v2320_v40 = vpop.f32.mrf.mxu1 }
 0x5b1   :  { %v861_v41 = vmul.f32 2.0, %v2320_v40  ;;  %v885_v50 = vsel %vm278_vm2, %v871_v45, inf  ;;  %v870_v52 = vsub.f32 %v867_v9, %v858_v42 }
 0x5b2   :  { %v837_v43 = vpop.f32.mrf.mxu1 }
 0x5b3   :  { %877 = vmin.xlane.f32.xlu1 %v876_v44  ;;  %v873_v46 = vsub.f32 %v867_v9, %v861_v41  ;;  %v860_v49 = vmul.f32 2.0, %v837_v43  ;;  %v882_v54 = vsel %vm278_vm2, %v870_v52, inf }
 0x5b4   :  { %v2323_v47 = vpop.f32.mrf.mxu1 }
 0x5b5   :  { %v891_v48 = vsel %vm278_vm2, %v873_v46, inf  ;;  %v872_v56 = vsub.f32 %v867_v9, %v860_v49  ;;  %v863_v57 = vmul.f32 2.0, %v2323_v47 }
 0x5b6   :  { %892 = vmin.xlane.f32.xlu0 %v891_v48  ;;  %v847_v53 = vpop.f32.mrf.mxu1 }
 0x5b7   :  { %886 = vmin.xlane.f32.xlu1 %v885_v50  ;;  %v862_v55 = vmul.f32 2.0, %v847_v53  ;;  %v888_v58 = vsel %vm278_vm2, %v872_v56, inf  ;;  %v875_v61 = vsub.f32 %v867_v9, %v863_v57 }
 0x5b9   :  { %v874_v59 = vsub.f32 %v867_v9, %v862_v55  ;;  %v897_v62 = vsel %vm278_vm2, %v875_v61, inf }
 0x5bb   :  { %883 = vmin.xlane.f32.xlu1 %v882_v54  ;;  %v894_v60 = vsel %vm278_vm2, %v874_v59, inf }
 0x5bf   :  { %889 = vmin.xlane.f32.xlu1 %v888_v58 }
 0x5c3   :  { %895 = vmin.xlane.f32.xlu1 %v894_v60 }
 0x5c7   :  { %898 = vmin.xlane.f32.xlu1 %v897_v62 }
 0x638   :  { %v881_v63 = vpop.xlane.xlu1 %880 }
 0x639   :  { %vm901_vm4 = vcmp.eq.f32.partialorder %v869_v1, %v881_v63 }
 0x63a   :  { %v909_v3 = vsel %vm901_vm4, %v2632_v51, 8 }
 0x63b   :  { %v2750_v4 = vsel %vm278_vm2, %v909_v3, 2147483647 }
 0x63c   :  { %v878_v13 = vpop.xlane.xlu1 %877  ;;  %v933_v0 = vshra.s32 %v2750_v4, 16  ;;  %v932_v48 = vand.u32 65535, %v2750_v4 }
 0x63d   :  { %vm900_vm5 = vcmp.eq.f32.partialorder %v868_v39, %v878_v13 }
 0x63e   :  { %v908_v16 = vsel %vm900_vm5, %v2632_v51, 8  ;;  %v935_v17 = vcvt.s32.f32 %v933_v0 }
 0x63f   :  { %v916_v18 = vsel %vm278_vm2, %v908_v16, 2147483647  ;;  %v893_v19 = vpop.xlane.xlu0 %892 }
 0x640   :  { %936 = vmin.xlane.f32.xlu1 %v935_v17  ;;  %v887_v20 = vpop.xlane.xlu1 %886  ;;  %v918_v21 = vshra.s32 %v916_v18, 16  ;;  %vm905_vm6 = vcmp.eq.f32.partialorder %v873_v46, %v893_v19 }
 0x641   :  { %vm903_vm7 = vcmp.eq.f32.partialorder %v871_v45, %v887_v20  ;;  %v913_v25 = vsel %vm905_vm6, %v2632_v51, 8  ;;  %v917_v45 = vand.u32 65535, %v916_v18 }
 0x642   :  { %v911_v22 = vsel %vm903_vm7, %v2632_v51, 8  ;;  %v920_v23 = vcvt.s32.f32 %v918_v21  ;;  %v991_v30 = vsel %vm278_vm2, %v913_v25, 2147483647 }
 0x643   :  { %v961_v24 = vsel %vm278_vm2, %v911_v22, 2147483647  ;;  %v993_v8 = vshra.s32 %v991_v30, 16  ;;  %v919_v47 = vcvt.s32.f32 %v917_v45 }
 0x644   :  { %921 = vmin.xlane.f32.xlu1 %v920_v23  ;;  %v884_v26 = vpop.xlane.xlu1 %883  ;;  %v963_v27 = vshra.s32 %v961_v24, 16  ;;  %v962_v53 = vand.u32 65535, %v961_v24 }
 0x645   :  { %vm902_vm8 = vcmp.eq.f32.partialorder %v870_v52, %v884_v26  ;;  %v995_v12 = vcvt.s32.f32 %v993_v8  ;;  %v934_v52 = vcvt.s32.f32 %v932_v48 }
 0x646   :  { %v910_v28 = vsel %vm902_vm8, %v2632_v51, 8  ;;  %v965_v29 = vcvt.s32.f32 %v963_v27  ;;  %v964_v57 = vcvt.s32.f32 %v962_v53 }
 0x647   :  { %v946_v31 = vsel %vm278_vm2, %v910_v28, 2147483647 }
 0x648   :  { %966 = vmin.xlane.f32.xlu1 %v965_v29  ;;  %v890_v32 = vpop.xlane.xlu1 %889  ;;  %v948_v33 = vshra.s32 %v946_v31, 16  ;;  %v947_v55 = vand.u32 65535, %v946_v31 }
 0x649   :  { %vm904_vm9 = vcmp.eq.f32.partialorder %v872_v56, %v890_v32 }
 0x64a   :  { %v912_v6 = vsel %vm904_vm9, %v2632_v51, 8  ;;  %v950_v5 = vcvt.s32.f32 %v948_v33  ;;  %v949_v58 = vcvt.s32.f32 %v947_v55 }
 0x64b   :  { %v976_v9 = vsel %vm278_vm2, %v912_v6, 2147483647 }
 0x64c   :  { %951 = vmin.xlane.f32.xlu1 %v950_v5  ;;  %v896_v10 = vpop.xlane.xlu1 %895  ;;  %v978_v34 = vshra.s32 %v976_v9, 16  ;;  %v977_v3 = vand.u32 65535, %v976_v9 }
 0x64d   :  { %vm906_vm10 = vcmp.eq.f32.partialorder %v874_v59, %v896_v10  ;;  %v992_v59 = vand.u32 65535, %v991_v30 }
 0x64e   :  { %v914_v11 = vsel %vm906_vm10, %v2632_v51, 8  ;;  %v980_v38 = vcvt.s32.f32 %v978_v34  ;;  %v979_v0 = vcvt.s32.f32 %v977_v3 }
 0x64f   :  { %v1006_v1 = vsel %vm278_vm2, %v914_v11, 2147483647  ;;  %v994_v63 = vcvt.s32.f32 %v992_v59 }
 0x650   :  { %996 = vmin.xlane.f32.xlu1 %v995_v12  ;;  %v899_v36 = vpop.xlane.xlu1 %898  ;;  %v1008_v39 = vshra.s32 %v1006_v1, 16  ;;  %v1007_v16 = vand.u32 65535, %v1006_v1 }
 0x651   :  { %vm907_vm11 = vcmp.eq.f32.partialorder %v875_v61, %v899_v36 }
 0x652   :  { %v915_v37 = vsel %vm907_vm11, %v2632_v51, 8  ;;  %v1010_v41 = vcvt.s32.f32 %v1008_v39  ;;  %v1009_v19 = vcvt.s32.f32 %v1007_v16  ;;  %v2790_v16 = vld [vmem:[%s3052_s0] sm:$0xff] }
 0x653   :  { %v1021_v40 = vsel %vm278_vm2, %v915_v37, 2147483647 }
 0x654   :  { %981 = vmin.xlane.f32.xlu1 %v980_v38  ;;  %v1023_v42 = vshra.s32 %v1021_v40, 16  ;;  %v1022_v20 = vand.u32 65535, %v1021_v40 }
 0x656   :  { %v1025_v43 = vcvt.s32.f32 %v1023_v42 }
 0x658   :  { %1011 = vmin.xlane.f32.xlu1 %v1010_v41 }
 0x65c   :  { %1026 = vmin.xlane.f32.xlu1 %v1025_v43 }
 0x6c9   :  { %v937_v44 = vpop.xlane.xlu1 %936 }
 0x6ca   :  { %vm938_vm13 = vcmp.eq.f32.partialorder %v935_v17, %v937_v44  ;;  %v943_v27 = vcvt.f32.s32 %v937_v44 }
 0x6cb   :  { %v939_v54 = vsel %vm938_vm13, %v934_v52, inf }
 0x6cc   :  { %v944_v33 = vshll.u32 %v943_v27, 16 }
 0x6cd   :  { %v922_v46 = vpop.xlane.xlu1 %921 }
 0x6ce   :  { %vm923_vm12 = vcmp.eq.f32.partialorder %v920_v23, %v922_v46  ;;  %v1024_v23 = vcvt.s32.f32 %v1022_v20  ;;  %v928_v25 = vcvt.f32.s32 %v922_v46 }
 0x6cf   :  { %v924_v49 = vsel %vm923_vm12, %v919_v47, inf }
 0x6d0   :  { %925 = vmin.xlane.f32.xlu1 %v924_v49  ;;  %v929_v28 = vshll.u32 %v928_v25, 16  ;;  %v2128_v25 = vld [vmem:[%s3054_s2 + $0x8] sm:$0xff] }
 0x6d1   :  { %v967_v50 = vpop.xlane.xlu1 %966 }
 0x6d2   :  { %vm968_vm15 = vcmp.eq.f32.partialorder %v965_v29, %v967_v50  ;;  %v973_v31 = vcvt.f32.s32 %v967_v50 }
 0x6d3   :  { %v969_v60 = vsel %vm968_vm15, %v964_v57, inf }
 0x6d4   :  { %940 = vmin.xlane.f32.xlu1 %v939_v54  ;;  %v974_v10 = vshll.u32 %v973_v31, 16  ;;  %v2819_v31 = vld [vmem:[%s3052_s0 + $0x10] sm:$0xff] }
 0x6d5   :  { %v952_v56 = vpop.xlane.xlu1 %951 }
 0x6d6   :  { %vm953_vm3 = vcmp.eq.f32.partialorder %v950_v5, %v952_v56  ;;  %v958_v6 = vcvt.f32.s32 %v952_v56 }
 0x6d7   :  { %v954_v61 = vsel %vm953_vm3, %v949_v58, inf }
 0x6d8   :  { %970 = vmin.xlane.f32.xlu1 %v969_v60  ;;  %955 = vmin.xlane.f32.xlu0 %v954_v61  ;;  %v959_v34 = vshll.u32 %v958_v6, 16  ;;  %v2842_v6 = vld [vmem:[%s3052_s0 + $0x30] sm:$0xff] }
 0x6d9   :  { %v997_v62 = vpop.xlane.xlu1 %996 }
 0x6da   :  { %vm998_vm4 = vcmp.eq.f32.partialorder %v995_v12, %v997_v62 }
 0x6db   :  { %v999_v4 = vsel %vm998_vm4, %v994_v63, inf }
 0x6dc   :  { %1000 = vmin.xlane.f32.xlu1 %v999_v4 }
 0x6dd   :  { %v982_v13 = vpop.xlane.xlu1 %981 }
 0x6de   :  { %vm983_vm5 = vcmp.eq.f32.partialorder %v980_v38, %v982_v13  ;;  %v988_v42 = vcvt.f32.s32 %v982_v13 }
 0x6df   :  { %v984_v17 = vsel %vm983_vm5, %v979_v0, inf }
 0x6e0   :  { %985 = vmin.xlane.f32.xlu0 %v984_v17  ;;  %v989_v47 = vshll.u32 %v988_v42, 16 }
 0x6e1   :  { %v1012_v18 = vpop.xlane.xlu1 %1011 }
 0x6e2   :  { %vm1013_vm6 = vcmp.eq.f32.partialorder %v1010_v41, %v1012_v18  ;;  %v1003_v41 = vcvt.f32.s32 %v997_v62  ;;  %v1018_v48 = vcvt.f32.s32 %v1012_v18 }
 0x6e3   :  { %v1014_v21 = vsel %vm1013_vm6, %v1009_v19, inf }
 0x6e4   :  { %1015 = vmin.xlane.f32.xlu0 %v1014_v21  ;;  %v1004_v46 = vshll.u32 %v1003_v41, 16  ;;  %v1019_v54 = vshll.u32 %v1018_v48, 16 }
 0x6e5   :  { %v1027_v22 = vpop.xlane.xlu1 %1026 }
 0x6e6   :  { %vm1028_vm7 = vcmp.eq.f32.partialorder %v1025_v43, %v1027_v22  ;;  %v1033_v56 = vcvt.f32.s32 %v1027_v22 }
 0x6e7   :  { %v1029_v24 = vsel %vm1028_vm7, %v1024_v23, inf }
 0x6e8   :  { %1030 = vmin.xlane.f32.xlu1 %v1029_v24  ;;  %v1034_v61 = vshll.u32 %v1033_v56, 16 }
 0x759   :  { %v926_v26 = vpop.xlane.xlu1 %925 }
 0x75a   :  { %v927_v29 = vcvt.f32.s32 %v926_v26 }
 0x75c   :  { %v930_v30 = vadd.s32 %v929_v28, %v927_v29 }
 0x75d   :  { %v941_v32 = vpop.xlane.xlu1 %940 }
 0x75e   :  { %v942_v5 = vcvt.f32.s32 %v941_v32  ;;  %vm1036_vm8 = vcmp.eq.s32.totalorder %v2632_v51, %v930_v30  ;;  %v2810_v30 = vld [vmem:[%s3052_s0 + $0x8] sm:$0xff]  ;;  %v2826_v32 = vld [vmem:[%s3052_s0 + $0x38] sm:$0xff] }
 0x75f   :  { %v1052_v8 = vsel %vm1036_vm8, 1.0, %v2478_v2 }
 0x760   :  { %v945_v9 = vadd.s32 %v944_v33, %v942_v5  ;;  %1060 = vxpose.xlu0.b32.start [1/8] (short) (narrow) %v1052_v8, 8  ;;  %v2835_v33 = vld [vmem:[%s3052_s0 + $0x18] sm:$0xff]  ;;  %v2848_v5 = vld [vmem:[%s3052_s0 + $0x20] sm:$0xff]  ;;  %v2858_v8 = vld [vmem:[%s3052_s0 + $0x28] sm:$0xff] }
 0x761   :  { %v956_v11 = vpop.xlane.xlu0 %955  ;;  %v971_v12 = vpop.xlane.xlu1 %970 }
 0x762   :  { %v957_v1 = vcvt.f32.s32 %v956_v11  ;;  %v972_v36 = vcvt.f32.s32 %v971_v12  ;;  %vm1037_vm9 = vcmp.eq.s32.totalorder %v2632_v51, %v945_v9 }
 0x763   :  { %v1053_v37 = vsel %vm1037_vm9, 1.0, %v2478_v2 }
 0x764   :  { %v960_v38 = vadd.s32 %v959_v34, %v957_v1  ;;  %v975_v39 = vadd.s32 %v974_v10, %v972_v36  ;;  %1061 = vxpose.xlu0.b32.cont [2/8] (short) (narrow) %v1053_v37, 8 }
 0x765   :  { %v1001_v40 = vpop.xlane.xlu1 %1000 }
 0x766   :  { %vm1038_vm10 = vcmp.eq.s32.totalorder %v2632_v51, %v960_v38  ;;  %v1002_v44 = vcvt.f32.s32 %v1001_v40  ;;  %vm1039_vm11 = vcmp.eq.s32.totalorder %v2632_v51, %v975_v39 }
 0x767   :  { %v1054_v43 = vsel %vm1038_vm10, 1.0, %v2478_v2  ;;  %v1055_v50 = vsel %vm1039_vm11, 1.0, %v2478_v2 }
 0x768   :  { %1062 = vxpose.xlu0.b32.cont [3/8] (short) (narrow) %v1054_v43, 8  ;;  %v1005_v52 = vadd.s32 %v1004_v46, %v1002_v44 }
 0x769   :  { %v986_v45 = vpop.xlane.xlu0 %985 }
 0x76a   :  { %v987_v49 = vcvt.f32.s32 %v986_v45  ;;  %vm1041_vm13 = vcmp.eq.s32.totalorder %v2632_v51, %v1005_v52 }
 0x76b   :  { %v1057_v63 = vsel %vm1041_vm13, 1.0, %v2478_v2 }
 0x76c   :  { %v990_v53 = vadd.s32 %v989_v47, %v987_v49  ;;  %1063 = vxpose.xlu0.b32.cont [4/8] (short) (narrow) %v1055_v50, 8 }
 0x76d   :  { %v1016_v55 = vpop.xlane.xlu0 %1015 }
 0x76e   :  { %v1017_v57 = vcvt.f32.s32 %v1016_v55  ;;  %vm1040_vm12 = vcmp.eq.s32.totalorder %v2632_v51, %v990_v53 }
 0x76f   :  { %v1056_v58 = vsel %vm1040_vm12, 1.0, %v2478_v2 }
 0x770   :  { %v1020_v59 = vadd.s32 %v1019_v54, %v1017_v57  ;;  %1064 = vxpose.xlu0.b32.cont [5/8] (short) (narrow) %v1056_v58, 8 }
 0x771   :  { %v1031_v60 = vpop.xlane.xlu1 %1030 }
 0x772   :  { %v1032_v62 = vcvt.f32.s32 %v1031_v60  ;;  %vm1042_vm15 = vcmp.eq.s32.totalorder %v2632_v51, %v1020_v59 }
 0x773   :  { %v1058_v4 = vsel %vm1042_vm15, 1.0, %v2478_v2 }
 0x774   :  { %v1035_v3 = vadd.s32 %v1034_v61, %v1032_v62  ;;  %1065 = vxpose.xlu0.b32.cont [6/8] (short) (narrow) %v1057_v63, 8 }
 0x776   :  { %vm1043_vm3 = vcmp.eq.s32.totalorder %v2632_v51, %v1035_v3 }
 0x777   :  { %v1059_v13 = vsel %vm1043_vm3, 1.0, %v2478_v2 }
 0x778   :  { %1066 = vxpose.xlu0.b32.cont [7/8] (short) (narrow) %v1058_v4, 8 }
 0x77c   :  { %1067 = vxpose.xlu0.b32.end [8/8] (short) (narrow) %v1059_v13, 8 }
 0x7a5   :  { %2441 = vset.pattern.permute.xlu0 %v2481_v35 }
 0x7dc   :  { %v1076_v0 = vpop.trf.xlu0 }
 0x7dd   :  { %2341 = vmatmul.mubr.msk.f32.vlgmr.msra.gmra.mxu0 %vm511_vm14, %v1076_v0  ;;  %2360 = vmatmul.mubr.msk.f32.vlgmr.msra.gmra.mxu1 %vm511_vm14, %v1076_v0 }
 0x7de   :  { %2369 = vmatprep.mubr.msk.f32.mxu1 %vm27_vm0, %v2790_v16  ;;  %2364 = vmatprep.mubr.msk.f32.mxu0 %vm2479_vm1, %v2478_v2 }
 0x89d   :  { %v1161_v17 = vpop.f32.mrf.mxu0  ;;  %v1231_v18 = vpop.f32.mrf.mxu1 }
 0x89e   :  { %1237 = vperm.xlu1 %2440, %v1231_v18  }
 0x89f   :  { %v2342_v35 = vpop.f32.mrf.mxu0  ;;  %v2361_v19 = vpop.f32.mrf.mxu1 }
 0x919   :  { %v1238_v20 = vpop.permute.xlu1 %1237 }
 0x91a   :  { %2444 = vrcp.f32 %v1238_v20 }
 0x927   :  { %v2445_v21 = vpop.eup %2444 }
 0x928   :  { %v1241_v22 = vmul.f32 %v2445_v21, %v1161_v17 }
 0x92a   :  { %vm1242_vm4 = vcmp.ne.f32.partialorder %v1241_v22, %v1241_v22 }
 0x92b   :  { %v1243_v23 = vsel %vm1242_vm4, 1.0, %v2478_v2 }
 0x92c   :  { %v1244_v24 = vsel %vm27_vm0, %v1243_v23, -inf }
 0x92d   :  { %1245 = vmax.xlane.f32.xlu1 %v1244_v24 }
 0x9b6   :  { %v1246_v26 = vpop.xlane.xlu1 %1245 }
 0x9b7   :  { %vm1247_vm5 = vcmp.gt.f32.partialorder %v1246_v26, 0.0 }
 0x9b8   :  { %v1252_v27 = vsel %vm1247_vm5, %v2128_v25, %v1241_v22 }
 0x9b9   :  { %1253 = vst.msk [vmem:[#allocation2] sm:$0xff] %vm27_vm0, %v1252_v27 }
 0x9c0   :  { %v1254_v28 = vld [vmem:[#allocation2] sm:$0xff] }
 0x9c1   :  { %v1255_v29 = vmul.f32 %v1254_v28, %v1254_v28  ;;  %2367 = vmatprep.subr.msk.mxu1 %vm27_vm0, %v1254_v28 }
 0x9c2   :  { %2368 = vmatpush3.xpose.msk.msra.mxu1 %vm27_vm0, %v1254_v28 }
 0x9c3   :  { %2363 = vmatpush3.xpose.msk.msra.mxu0 %vm27_vm0, %v1255_v29  ;;  %2400 = vmatprep.subr.mxu1 %v2478_v2 }
 0x9c4   :  { %2381 = vmatprep.subr.mxu0 %v2478_v2 }
 0x9c5   :  { %2370 = vmatmul.mubr.msk.f32.vlgmr.msra.gmra.mxu1 %vm27_vm0, %v2810_v30 }
 0x9c6   :  { %2365 = vmatmul.mubr.msk.f32.vlgmr.msra.gmra.mxu0 %vm27_vm0, %v2480_v7  ;;  %2372 = vmatprep.mubr.msk.f32.mxu1 %vm27_vm0, %v2819_v31 }
 0x9c7   :  { %2382 = vmatpush3.msra.mxu0 %v2826_v32  ;;  %2401 = vmatpush3.msra.mxu1 %v2480_v7 }
 0x9c8   :  { %2383 = vmatprep.subr.mxu0 %v2478_v2  ;;  %2402 = vmatprep.subr.mxu1 %v2478_v2 }
 0x9c9   :  { %2373 = vmatmul.mubr.msk.f32.gmra.mxu1 %vm27_vm0, %v2835_v33  ;;  %2384 = vmatpush3.msra.mxu0 %v2842_v6 }
 0x9ca   :  { %2375 = vmatprep.mubr.msk.f32.mxu1 %vm27_vm0, %v2848_v5  ;;  %2403 = vmatpush3.msra.mxu1 %v2480_v7 }
 0x9cb   :  { %2385 = vmatprep.subr.mxu0 %v2478_v2  ;;  %2404 = vmatprep.subr.mxu1 %v2478_v2 }
 0x9cc   :  { %2386 = vmatpush3.msra.mxu0 %v2858_v8  ;;  %2405 = vmatpush3.msra.mxu1 %v2480_v7 }
 0x9cd   :  { %2376 = vmatmul.mubr.msk.f32.gmra.mxu1 %vm27_vm0, %v2858_v8  ;;  %2387 = vmatprep.subr.mxu0 %v2478_v2 }
 0x9ce   :  { %2378 = vmatprep.mubr.msk.f32.mxu1 %vm27_vm0, %v2842_v6  ;;  %2406 = vmatprep.subr.mxu1 %v2478_v2 }
 0x9cf   :  { %2388 = vmatpush3.msra.mxu0 %v2848_v5  ;;  %2407 = vmatpush3.msra.mxu1 %v2480_v7 }
 0x9d0   :  { %2389 = vmatprep.subr.mxu0 %v2478_v2  ;;  %2408 = vmatprep.subr.mxu1 %v2478_v2 }
 0x9d1   :  { %2379 = vmatmul.mubr.msk.f32.gmra.mxu1 %vm27_vm0, %v2826_v32  ;;  %2390 = vmatpush3.msra.mxu0 %v2835_v33 }
 0x9d2   :  { %2409 = vmatpush3.msra.mxu1 %v2480_v7  ;;  %2391 = vmatprep.subr.mxu0 %v2478_v2 }
 0x9d3   :  { %2410 = vmatprep.subr.mxu1 %v2478_v2  ;;  %2392 = vmatpush3.msra.mxu0 %v2819_v31 }
 0x9d4   :  { %2411 = vmatpush3.msra.mxu1 %v2480_v7  ;;  %2393 = vmatprep.subr.mxu0 %v2478_v2 }
 0x9d5   :  { %2412 = vmatprep.subr.mxu1 %v2478_v2  ;;  %2394 = vmatpush3.msra.mxu0 %v2810_v30 }
 0x9d6   :  { %2413 = vmatpush3.msra.mxu1 %v2480_v7  ;;  %2395 = vmatprep.subr.mxu0 %v2478_v2 }
 0x9d7   :  { %2414 = vmatprep.subr.mxu1 %v2478_v2  ;;  %2396 = vmatpush3.msra.mxu0 %v2790_v16 }
 0x9d8   :  { %2397 = vmatprep.mubr.msk.f32.mxu0 %vm2479_vm1, %v2478_v2  ;;  %2415 = vmatpush3.msra.mxu1 %v2480_v7 }
 0x9d9   :  { %2416 = vmatprep.mubr.msk.f32.mxu1 %vm2479_vm1, %v2478_v2 }
 0xa85   :  { %v2371_v9 = vpop.f32.mrf.mxu1 }
 0xa86   :  { %v1438_v10 = vmul.f32 2.0, %v2371_v9  ;;  %v1325_v11 = vpop.f32.mrf.mxu0 }
 0xa87   :  { %v1448_v12 = vrot.slane %v1325_v11, %v2621_v15  ;;  %v1398_v34 = vpop.f32.mrf.mxu1 }
 0xa88   :  { %v1437_v1 = vmul.f32 2.0, %v1398_v34  ;;  %v2366_v36 = vpop.f32.mrf.mxu0 }
 0xa89   :  { %v2374_v37 = vpop.f32.mrf.mxu1  ;;  %v1450_v38 = vsub.f32 %v1448_v12, %v1438_v10 }
 0xa8a   :  { %v1440_v39 = vmul.f32 2.0, %v2374_v37  ;;  %v1449_v42 = vsub.f32 %v1448_v12, %v1437_v1 }
 0xa8b   :  { %v1408_v40 = vpop.f32.mrf.mxu1  ;;  %v1460_v41 = vsel %vm278_vm2, %v1450_v38, inf }
 0xa8c   :  { %1461 = vmin.xlane.f32.xlu1 %v1460_v41  ;;  %v1439_v44 = vmul.f32 2.0, %v1408_v40  ;;  %v1457_v46 = vsel %vm278_vm2, %v1449_v42, inf  ;;  %v1452_v47 = vsub.f32 %v1448_v12, %v1440_v39 }
 0xa8d   :  { %v2377_v7 = vpop.f32.mrf.mxu1 }
 0xa8e   :  { %v1442_v43 = vmul.f32 2.0, %v2377_v7  ;;  %v1466_v52 = vsel %vm278_vm2, %v1452_v47, inf  ;;  %v1451_v53 = vsub.f32 %v1448_v12, %v1439_v44 }
 0xa8f   :  { %v1418_v45 = vpop.f32.mrf.mxu1 }
 0xa90   :  { %1458 = vmin.xlane.f32.xlu1 %v1457_v46  ;;  %v1454_v15 = vsub.f32 %v1448_v12, %v1442_v43  ;;  %v1441_v50 = vmul.f32 2.0, %v1418_v45  ;;  %v1463_v56 = vsel %vm278_vm2, %v1451_v53, inf }
 0xa91   :  { %v2380_v48 = vpop.f32.mrf.mxu1 }
 0xa92   :  { %v1472_v49 = vsel %vm278_vm2, %v1454_v15, inf  ;;  %v1453_v57 = vsub.f32 %v1448_v12, %v1441_v50  ;;  %v1444_v58 = vmul.f32 2.0, %v2380_v48 }
 0xa93   :  { %1473 = vmin.xlane.f32.xlu0 %v1472_v49  ;;  %v1428_v55 = vpop.f32.mrf.mxu1 }
 0xa94   :  { %1467 = vmin.xlane.f32.xlu1 %v1466_v52  ;;  %v1443_v54 = vmul.f32 2.0, %v1428_v55  ;;  %v1469_v59 = vsel %vm278_vm2, %v1453_v57, inf  ;;  %v1456_v62 = vsub.f32 %v1448_v12, %v1444_v58 }
 0xa96   :  { %v1455_v60 = vsub.f32 %v1448_v12, %v1443_v54  ;;  %v1478_v63 = vsel %vm278_vm2, %v1456_v62, inf }
 0xa98   :  { %1464 = vmin.xlane.f32.xlu1 %v1463_v56  ;;  %v1475_v61 = vsel %vm278_vm2, %v1455_v60, inf }
 0xa9c   :  { %1470 = vmin.xlane.f32.xlu1 %v1469_v59 }
 0xaa0   :  { %1476 = vmin.xlane.f32.xlu1 %v1475_v61 }
 0xaa4   :  { %1479 = vmin.xlane.f32.xlu1 %v1478_v63 }
 0xb15   :  { %v1462_v3 = vpop.xlane.xlu1 %1461 }
 0xb16   :  { %vm1482_vm1 = vcmp.eq.f32.partialorder %v1450_v38, %v1462_v3 }
 0xb17   :  { %v1490_v4 = vsel %vm1482_vm1, %v2632_v51, 8 }
 0xb18   :  { %v1512_v13 = vsel %vm278_vm2, %v1490_v4, 2147483647 }
 0xb19   :  { %v1459_v0 = vpop.xlane.xlu1 %1458  ;;  %v1514_v17 = vshra.s32 %v1512_v13, 16  ;;  %v1513_v50 = vand.u32 65535, %v1512_v13 }
 0xb1a   :  { %vm1481_vm6 = vcmp.eq.f32.partialorder %v1449_v42, %v1459_v0 }
 0xb1b   :  { %v1489_v18 = vsel %vm1481_vm6, %v2632_v51, 8  ;;  %v1516_v35 = vcvt.s32.f32 %v1514_v17  ;;  %v1515_v55 = vcvt.s32.f32 %v1513_v50 }
 0xb1c   :  { %v1497_v19 = vsel %vm278_vm2, %v1489_v18, 2147483647  ;;  %v1474_v20 = vpop.xlane.xlu0 %1473 }
 0xb1d   :  { %1517 = vmin.xlane.f32.xlu1 %v1516_v35  ;;  %v1468_v21 = vpop.xlane.xlu1 %1467  ;;  %v1499_v22 = vshra.s32 %v1497_v19, 16  ;;  %vm1486_vm7 = vcmp.eq.f32.partialorder %v1454_v15, %v1474_v20  ;;  %v1498_v52 = vand.u32 65535, %v1497_v19 }
 0xb1e   :  { %vm1484_vm8 = vcmp.eq.f32.partialorder %v1452_v47, %v1468_v21  ;;  %v1494_v26 = vsel %vm1486_vm7, %v2632_v51, 8 }
 0xb1f   :  { %v1492_v23 = vsel %vm1484_vm8, %v2632_v51, 8  ;;  %v1501_v24 = vcvt.s32.f32 %v1499_v22  ;;  %v1572_v10 = vsel %vm278_vm2, %v1494_v26, 2147483647  ;;  %vm1835_vm8 = vcmask 7168  }
 0xb20   :  { %v1542_v25 = vsel %vm278_vm2, %v1492_v23, 2147483647  ;;  %v1574_v37 = vshra.s32 %v1572_v10, 16  ;;  %v1573_v13 = vand.u32 65535, %v1572_v10 }
 0xb21   :  { %1502 = vmin.xlane.f32.xlu1 %v1501_v24  ;;  %v1465_v27 = vpop.xlane.xlu1 %1464  ;;  %v1544_v28 = vshra.s32 %v1542_v25, 16  ;;  %v1543_v58 = vand.u32 65535, %v1542_v25 }
 0xb22   :  { %vm1483_vm9 = vcmp.eq.f32.partialorder %v1451_v53, %v1465_v27  ;;  %v1576_v41 = vcvt.s32.f32 %v1574_v37 }
 0xb23   :  { %v1491_v29 = vsel %vm1483_vm9, %v2632_v51, 8  ;;  %v1546_v9 = vcvt.s32.f32 %v1544_v28 }
 0xb24   :  { %v1527_v11 = vsel %vm278_vm2, %v1491_v29, 2147483647 }
 0xb25   :  { %1547 = vmin.xlane.f32.xlu1 %v1546_v9  ;;  %v1471_v12 = vpop.xlane.xlu1 %1470  ;;  %v1529_v34 = vshra.s32 %v1527_v11, 16 }
 0xb26   :  { %vm1485_vm10 = vcmp.eq.f32.partialorder %v1453_v57, %v1471_v12  ;;  %v1500_v57 = vcvt.s32.f32 %v1498_v52 }
 0xb27   :  { %v1493_v1 = vsel %vm1485_vm10, %v2632_v51, 8  ;;  %v1531_v36 = vcvt.s32.f32 %v1529_v34 }
 0xb28   :  { %v1557_v38 = vsel %vm278_vm2, %v1493_v1, 2147483647 }
 0xb29   :  { %1532 = vmin.xlane.f32.xlu1 %v1531_v36  ;;  %v1477_v39 = vpop.xlane.xlu1 %1476  ;;  %v1559_v42 = vshra.s32 %v1557_v38, 16  ;;  %v1558_v17 = vand.u32 65535, %v1557_v38 }
 0xb2a   :  { %vm1487_vm11 = vcmp.eq.f32.partialorder %v1455_v60, %v1477_v39  ;;  %v1528_v60 = vand.u32 65535, %v1527_v11 }
 0xb2b   :  { %v1495_v40 = vsel %vm1487_vm11, %v2632_v51, 8  ;;  %v1561_v46 = vcvt.s32.f32 %v1559_v42  ;;  %v1560_v22 = vcvt.s32.f32 %v1558_v17 }
 0xb2c   :  { %v1587_v7 = vsel %vm278_vm2, %v1495_v40, 2147483647  ;;  %v1530_v4 = vcvt.s32.f32 %v1528_v60 }
 0xb2d   :  { %1577 = vmin.xlane.f32.xlu1 %v1576_v41  ;;  %v1480_v43 = vpop.xlane.xlu1 %1479  ;;  %v1589_v44 = vshra.s32 %v1587_v7, 16  ;;  %v1588_v20 = vand.u32 65535, %v1587_v7 }
 0xb2e   :  { %vm1488_vm12 = vcmp.eq.f32.partialorder %v1456_v62, %v1480_v43  ;;  %v1545_v62 = vcvt.s32.f32 %v1543_v58 }
 0xb2f   :  { %v1496_v45 = vsel %vm1488_vm12, %v2632_v51, 8  ;;  %v1591_v48 = vcvt.s32.f32 %v1589_v44  ;;  %v1590_v25 = vcvt.s32.f32 %v1588_v20 }
 0xb30   :  { %v1602_v47 = vsel %vm278_vm2, %v1496_v45, 2147483647 }
 0xb31   :  { %1562 = vmin.xlane.f32.xlu1 %v1561_v46  ;;  %v1604_v15 = vshra.s32 %v1602_v47, 16  ;;  %v1603_v26 = vand.u32 65535, %v1602_v47 }
 0xb33   :  { %v1606_v49 = vcvt.s32.f32 %v1604_v15  ;;  %v1605_v29 = vcvt.s32.f32 %v1603_v26 }
 0xb35   :  { %1592 = vmin.xlane.f32.xlu1 %v1591_v48 }
 0xb39   :  { %1607 = vmin.xlane.f32.xlu1 %v1606_v49 }
 0xba6   :  { %v1518_v53 = vpop.xlane.xlu1 %1517 }
 0xba7   :  { %vm1519_vm13 = vcmp.eq.f32.partialorder %v1516_v35, %v1518_v53  ;;  %v1575_v35 = vcvt.s32.f32 %v1573_v13  ;;  %v1524_v10 = vcvt.f32.s32 %v1518_v53 }
 0xba8   :  { %v1520_v54 = vsel %vm1519_vm13, %v1515_v55, inf }
 0xba9   :  { %1521 = vmin.xlane.f32.xlu0 %v1520_v54  ;;  %v1525_v12 = vshll.u32 %v1524_v10, 16 }
 0xbaa   :  { %v1503_v56 = vpop.xlane.xlu1 %1502 }
 0xbab   :  { %vm1504_vm15 = vcmp.eq.f32.partialorder %v1501_v24, %v1503_v56  ;;  %v1509_v34 = vcvt.f32.s32 %v1503_v56 }
 0xbac   :  { %v1505_v59 = vsel %vm1504_vm15, %v1500_v57, inf }
 0xbad   :  { %1506 = vmin.xlane.f32.xlu1 %v1505_v59  ;;  %v1510_v38 = vshll.u32 %v1509_v34, 16 }
 0xbae   :  { %v1548_v61 = vpop.xlane.xlu1 %1547 }
 0xbaf   :  { %vm1549_vm3 = vcmp.eq.f32.partialorder %v1546_v9, %v1548_v61  ;;  %v1554_v39 = vcvt.f32.s32 %v1548_v61 }
 0xbb0   :  { %v1550_v63 = vsel %vm1549_vm3, %v1545_v62, inf }
 0xbb1   :  { %1551 = vmin.xlane.f32.xlu0 %v1550_v63  ;;  %v1555_v7 = vshll.u32 %v1554_v39, 16 }
 0xbb2   :  { %v1533_v3 = vpop.xlane.xlu1 %1532 }
 0xbb3   :  { %vm1534_vm4 = vcmp.eq.f32.partialorder %v1531_v36, %v1533_v3  ;;  %v1539_v43 = vcvt.f32.s32 %v1533_v3 }
 0xbb4   :  { %v1535_v0 = vsel %vm1534_vm4, %v1530_v4, inf }
 0xbb5   :  { %1536 = vmin.xlane.f32.xlu1 %v1535_v0  ;;  %v1540_v15 = vshll.u32 %v1539_v43, 16 }
 0xbb6   :  { %v1578_v18 = vpop.xlane.xlu1 %1577 }
 0xbb7   :  { %vm1579_vm5 = vcmp.eq.f32.partialorder %v1576_v41, %v1578_v18 }
 0xbb8   :  { %v1580_v19 = vsel %vm1579_vm5, %v1575_v35, inf }
 0xbb9   :  { %1581 = vmin.xlane.f32.xlu0 %v1580_v19 }
 0xbba   :  { %v1563_v21 = vpop.xlane.xlu1 %1562 }
 0xbbb   :  { %vm1564_vm1 = vcmp.eq.f32.partialorder %v1561_v46, %v1563_v21  ;;  %v1569_v54 = vcvt.f32.s32 %v1563_v21 }
 0xbbc   :  { %v1565_v23 = vsel %vm1564_vm1, %v1560_v22, inf }
 0xbbd   :  { %1566 = vmin.xlane.f32.xlu1 %v1565_v23  ;;  %v1570_v60 = vshll.u32 %v1569_v54, 16 }
 0xbbe   :  { %v1593_v24 = vpop.xlane.xlu1 %1592 }
 0xbbf   :  { %vm1594_vm6 = vcmp.eq.f32.partialorder %v1591_v48, %v1593_v24  ;;  %v1584_v48 = vcvt.f32.s32 %v1578_v18  ;;  %v1599_v61 = vcvt.f32.s32 %v1593_v24 }
 0xbc0   :  { %v1595_v27 = vsel %vm1594_vm6, %v1590_v25, inf }
 0xbc1   :  { %1596 = vmin.xlane.f32.xlu1 %v1595_v27  ;;  %v1585_v55 = vshll.u32 %v1584_v48, 16  ;;  %v1600_v13 = vshll.u32 %v1599_v61, 16 }
 0xbc2   :  { %v2917_v28 = vpop.xlane.xlu1 %1607 }
 0xbc3   :  { %vm1609_vm7 = vcmp.eq.f32.partialorder %v1606_v49, %v2917_v28  ;;  %v1614_v0 = vcvt.f32.s32 %v2917_v28 }
 0xbc4   :  { %v1610_v9 = vsel %vm1609_vm7, %v1605_v29, inf }
 0xbc5   :  { %1611 = vmin.xlane.f32.xlu0 %v1610_v9  ;;  %v1615_v20 = vshll.u32 %v1614_v0, 16 }
 0xc32   :  { %v1522_v11 = vpop.xlane.xlu0 %1521 }
 0xc33   :  { %v1523_v1 = vcvt.f32.s32 %v1522_v11 }
 0xc35   :  { %v1526_v36 = vadd.s32 %v1525_v12, %v1523_v1  ;;  %v1953_v1 = vmul.f32 %v2790_v16, %v2790_v16 }
 0xc36   :  { %v1507_v37 = vpop.xlane.xlu1 %1506 }
 0xc37   :  { %1837 = vst.msk [vmem:[%s3056_s4 + $0x8] sm:$0xff] %vm1835_vm8, %v1526_v36  ;;  %v1508_v40 = vcvt.f32.s32 %v1507_v37  ;;  %vm1618_vm10 = vcmp.eq.s32.totalorder %v2632_v51, %v1526_v36  ;;  %v1955_v36 = vmul.f32 %v2819_v31, %v2819_v31  ;;  %v1954_v37 = vmul.f32 %v2810_v30, %v2810_v30 }
 0xc38   :  { %v1634_v50 = vsel %vm1618_vm10, 1.0, %v2478_v2 }
 0xc39   :  { %v1511_v41 = vadd.s32 %v1510_v38, %v1508_v40  ;;  %v1961_v38 = vsel %vm27_vm0, %v1953_v1, 0.0  ;;  %v1964_v39 = vsel %vm27_vm0, %v1954_v37, 0.0  ;;  %v1967_v40 = vsel %vm27_vm0, %v1955_v36, 0.0 }
 0xc3a   :  { %v1552_v42 = vpop.xlane.xlu0 %1551 }
 0xc3b   :  { %1836 = vst.msk [vmem:[%s3056_s4] sm:$0xff] %vm1835_vm8, %v1511_v41  ;;  %v1553_v44 = vcvt.f32.s32 %v1552_v42  ;;  %vm1617_vm9 = vcmp.eq.s32.totalorder %v2632_v51, %v1511_v41  ;;  %v1957_v41 = vmul.f32 %v2848_v5, %v2848_v5 }
 0xc3c   :  { %v1633_v45 = vsel %vm1617_vm9, 1.0, %v2478_v2 }
 0xc3d   :  { %v1556_v46 = vadd.s32 %v1555_v7, %v1553_v44  ;;  %1641 = vxpose.xlu1.b32.start [1/8] (short) (narrow) %v1633_v45, 8  ;;  %v1973_v42 = vsel %vm27_vm0, %v1957_v41, 0.0  ;;  %v1958_v7 = vmul.f32 %v2858_v8, %v2858_v8  ;;  %v1959_v44 = vmul.f32 %v2842_v6, %v2842_v6 }
 0xc3e   :  { %v1537_v47 = vpop.xlane.xlu1 %1536 }
 0xc3f   :  { %1839 = vst.msk [vmem:[%s3056_s4 + $0x18] sm:$0xff] %vm1835_vm8, %v1556_v46  ;;  %v1538_v49 = vcvt.f32.s32 %v1537_v47  ;;  %vm1620_vm12 = vcmp.eq.s32.totalorder %v2632_v51, %v1556_v46  ;;  %v1976_v43 = vsel %vm27_vm0, %v1958_v7, 0.0  ;;  %v1979_v45 = vsel %vm27_vm0, %v1959_v44, 0.0  ;;  %v2142_v47 = vld [vmem:[%s3054_s2 + $0x10] sm:$0xff]  ;;  %s2482_s2 = smov [#allocation3]  }
 0xc40   :  { %v1636_v63 = vsel %vm1620_vm12, 1.0, %v2478_v2  ;;  %v1960_v46 = vmul.f32 %v2826_v32, %v2826_v32  ;;  %s2086_s20 = sshll.u32 %s2482_s2, 4  ;;  %s2087_s20 = int_to_ptr.vmem [resolvable:$true] %s2086_s20 }
 0xc41   :  { %v1541_v52 = vadd.s32 %v1540_v15, %v1538_v49  ;;  %1642 = vxpose.xlu1.b32.cont [2/8] (short) (narrow) %v1634_v50, 8  ;;  %s2456_s21 = scalar_lea.vmem %s2087_s20, 128  ;;  %p2461_p1 = scmp.lt.s32.totalorder %s2087_s20, %s2087_s20 }
 0xc42   :  { %v1582_v53 = vpop.xlane.xlu0 %1581  ;;  %p2457_p0 = scmp.ne.s32.totalorder %s2087_s20, %s2456_s21  ;;  %p2462_p2 = scmp.lt.s32.totalorder %s2456_s21, %s2456_s21 }
 0xc43   :  { %1838 = vst.msk [vmem:[%s3056_s4 + $0x10] sm:$0xff] %vm1835_vm8, %v1541_v52  ;;  %v1583_v56 = vcvt.f32.s32 %v1582_v53  ;;  %vm1619_vm11 = vcmp.eq.s32.totalorder %v2632_v51, %v1541_v52 }
 0xc44   :  { %v1635_v57 = vsel %vm1619_vm11, 1.0, %v2478_v2  ;;  %p2463_p3 = por %p2462_p2, %p2461_p1 }
 0xc45   :  { %v1586_v58 = vadd.s32 %v1585_v55, %v1583_v56  ;;  %1643 = vxpose.xlu1.b32.cont [3/8] (short) (narrow) %v1635_v57, 8 }
 0xc46   :  { %v1567_v59 = vpop.xlane.xlu1 %1566  ;;  %p2464_p4 = pnand %p2463_p3, %p2457_p0 }
 0xc47   :  { %1841 = vst.msk [vmem:[%s3056_s4 + $0x28] sm:$0xff] %vm1835_vm8, %v1586_v58  ;;  %v1568_v62 = vcvt.f32.s32 %v1567_v59  ;;  %vm1622_vm15 = vcmp.eq.s32.totalorder %v2632_v51, %v1586_v58 }
 0xc48   :  { %v1638_v22 = vsel %vm1622_vm15, 1.0, %v2478_v2 }
 0xc49   :  { %v1571_v3 = vadd.s32 %v1570_v60, %v1568_v62  ;;  %1644 = vxpose.xlu1.b32.cont [4/8] (short) (narrow) %v1636_v63, 8 }
 0xc4a   :  { %v1597_v4 = vpop.xlane.xlu1 %1596 }
 0xc4b   :  { %1840 = vst.msk [vmem:[%s3056_s4 + $0x20] sm:$0xff] %vm1835_vm8, %v1571_v3  ;;  %v1598_v17 = vcvt.f32.s32 %v1597_v4  ;;  %vm1621_vm13 = vcmp.eq.s32.totalorder %v2632_v51, %v1571_v3 }
 0xc4c   :  { %v1637_v18 = vsel %vm1621_vm13, 1.0, %v2478_v2 }
 0xc4d   :  { %v1601_v35 = vadd.s32 %v1600_v13, %v1598_v17  ;;  %1645 = vxpose.xlu1.b32.cont [5/8] (short) (narrow) %v1637_v18, 8 }
 0xc4e   :  { %v1612_v19 = vpop.xlane.xlu0 %1611 }
 0xc4f   :  { %1842 = vst.msk [vmem:[%s3056_s4 + $0x30] sm:$0xff] %vm1835_vm8, %v1601_v35  ;;  %v1613_v21 = vcvt.f32.s32 %v1612_v19  ;;  %vm1623_vm3 = vcmp.eq.s32.totalorder %v2632_v51, %v1601_v35 }
 0xc50   :  { %v1639_v24 = vsel %vm1623_vm3, 1.0, %v2478_v2 }
 0xc51   :  { %v1616_v23 = vadd.s32 %v1615_v20, %v1613_v21  ;;  %1646 = vxpose.xlu1.b32.cont [6/8] (short) (narrow) %v1638_v22, 8 }
 0xc53   :  { %1843 = vst.msk [vmem:[%s3056_s4 + $0x38] sm:$0xff] %vm1835_vm8, %v1616_v23  ;;  %vm1624_vm4 = vcmp.eq.s32.totalorder %v2632_v51, %v1616_v23 }
 0xc54   :  { %v1640_v25 = vsel %vm1624_vm4, 1.0, %v2478_v2 }
 0xc55   :  { %1647 = vxpose.xlu1.b32.cont [7/8] (short) (narrow) %v1639_v24, 8 }
 0xc59   :  { %1648 = vxpose.xlu1.b32.end [8/8] (short) (narrow) %v1640_v25, 8 }
 0xc80   :  { %1965 = vadd.xlane.f32.xlu1 %v1964_v39 }
 0xcb9   :  { %v1657_v26 = vpop.trf.xlu1 }
 0xcba   :  { %2398 = vmatmul.mubr.msk.f32.vlgmr.msra.gmra.mxu0 %vm511_vm14, %v1657_v26  ;;  %2417 = vmatmul.mubr.msk.f32.vlgmr.msra.gmra.mxu1 %vm511_vm14, %v1657_v26 }
 0xcbb   :  { %2421 = vmatprep.mubr.msk.f32.mxu0 %vm27_vm0, %v2790_v16  ;;  %2427 = vmatprep.mubr.msk.f32.mxu1 %vm27_vm0, %v2848_v5  ;;  %v1982_v5 = vsel %vm27_vm0, %v1960_v46, 0.0 }
 0xd7a   :  { %v1742_v27 = vpop.f32.mrf.mxu0  ;;  %v1812_v28 = vpop.f32.mrf.mxu1 }
 0xd7b   :  { %1818 = vperm.xlu0 %2441, %v1812_v28  }
 0xd7c   :  { %v2399_v29 = vpop.f32.mrf.mxu0  ;;  %v2418_v9 = vpop.f32.mrf.mxu1 }
 0xdf6   :  { %v1819_v51 = vpop.permute.xlu0 %1818 }
 0xdf7   :  { %2446 = vrcp.f32 %v1819_v51 }
 0xe04   :  { %v2447_v10 = vpop.eup %2446 }
 0xe05   :  { %v1822_v11 = vmul.f32 %v2447_v10, %v1742_v27 }
 0xe07   :  { %vm1823_vm5 = vcmp.ne.f32.partialorder %v1822_v11, %v1822_v11 }
 0xe08   :  { %v1824_v12 = vsel %vm1823_vm5, 1.0, %v2478_v2  ;;  %v1956_v2 = vmul.f32 %v2835_v33, %v2835_v33 }
 0xe09   :  { %v1825_v34 = vsel %vm27_vm0, %v1824_v12, -inf }
 0xe0a   :  { %1826 = vmax.xlane.f32.xlu0 %v1825_v34  ;;  %v1970_v16 = vsel %vm27_vm0, %v1956_v2, 0.0 }
 0xe0e   :  { %1962 = vadd.xlane.f32.xlu0 %v1961_v38 }
 0xe12   :  { %1968 = vadd.xlane.f32.xlu0 %v1967_v40 }
 0xe16   :  { %1971 = vadd.xlane.f32.xlu0 %v1970_v16 }
 0xe1a   :  { %1974 = vadd.xlane.f32.xlu0 %v1973_v42 }
 0xe1e   :  { %1977 = vadd.xlane.f32.xlu0 %v1976_v43 }
 0xe22   :  { %1980 = vadd.xlane.f32.xlu0 %v1979_v45 }
 0xe26   :  { %1983 = vadd.xlane.f32.xlu0 %v1982_v5 }
 0xe93   :  { %v1827_v15 = vpop.xlane.xlu0 %1826 }
 0xe94   :  { %vm1828_vm14 = vcmp.gt.f32.partialorder %v1827_v15, 0.0 }
 0xe95   :  { %v1833_v48 = vsel %vm1828_vm14, %v2142_v47, %v1822_v11 }
 0xe96   :  { %1834 = vst.msk [vmem:[#allocation2] sm:$0xff] %vm27_vm0, %v1833_v48 }
 0xe9d   :  { %v1844_v49 = vld [vmem:[#allocation2] sm:$0xff] }
 0xe9e   :  { %2419 = vmatprep.subr.msk.mxu0 %vm27_vm0, %v1844_v49  ;;  %2079 = vst.msk [vmem:[#allocation3] sm:$0xff] %vm27_vm0, %v1844_v49  ;;  %2433 = vmatprep.subr.msk.mxu1 %vm27_vm0, %v1844_v49 }
 0xe9f   :  { %2420 = vmatpush3.xpose.msk.msra.mxu0 %vm27_vm0, %v1844_v49  ;;  %2434 = vmatpush3.xpose.msk.msra.mxu1 %vm27_vm0, %v1844_v49 }
 0xea2   :  { %2422 = vmatmul.mubr.msk.f32.vlgmr.msra.gmra.mxu0 %vm27_vm0, %v2810_v30  ;;  %2428 = vmatmul.mubr.msk.f32.vlgmr.msra.gmra.mxu1 %vm27_vm0, %v2858_v8 }
 0xea3   :  { %2424 = vmatprep.mubr.msk.f32.mxu0 %vm27_vm0, %v2819_v31  ;;  %2430 = vmatprep.mubr.msk.f32.mxu1 %vm27_vm0, %v2842_v6 }
 0xea6   :  { %2425 = vmatmul.mubr.msk.f32.gmra.mxu0 %vm27_vm0, %v2835_v33  ;;  %2431 = vmatmul.mubr.msk.f32.gmra.mxu1 %vm27_vm0, %v2826_v32 }
 0xea7   :  { %2467 = shalt.err (!%p2464_p4)
}
 0xea8   :  { %2089 = dma.vmem_to_hbm [thread:$0]  %s2087_s20, 128, %s3055_s3, [#allocation4]   ;;  %v1963_v30 = vpop.xlane.xlu0 %1962  ;;  %v1966_v54 = vpop.xlane.xlu1 %1965  ;;  %v31_v42 = vadd.s32 8, %v2618_v14  ;;  %v32_v7 = vadd.s32 16, %v2618_v14  ;;  %v33_v43 = vadd.s32 24, %v2618_v14  ;;  %v34_v45 = vadd.s32 32, %v2618_v14 }
 0xea9   :  { %v35_v46 = vadd.s32 40, %v2618_v14  ;;  %v36_v5 = vadd.s32 48, %v2618_v14  ;;  %v37_v47 = vadd.s32 56, %v2618_v14 }
 0xeac   :  { %v1969_v31 = vpop.xlane.xlu0 %1968 }
 0xeb0   :  { %v1972_v33 = vpop.xlane.xlu0 %1971 }
 0xeb4   :  { %v1975_v6 = vpop.xlane.xlu0 %1974 }
 0xeb8   :  { %v1978_v8 = vpop.xlane.xlu0 %1977 }
 0xebc   :  { %v1981_v32 = vpop.xlane.xlu0 %1980 }
 0xec0   :  { %v1984_v13 = vpop.xlane.xlu0 %1983 }
 0xf62   :  { %v2423_v50 = vpop.f32.mrf.mxu0  ;;  %v2429_v52 = vpop.f32.mrf.mxu1 }
 0xf63   :  { %v1986_v53 = vmul.f32 2.0, %v2423_v50  ;;  %v1990_v55 = vmul.f32 2.0, %v2429_v52 }
 0xf64   :  { %v1934_v56 = vpop.f32.mrf.mxu1  ;;  %v1914_v57 = vpop.f32.mrf.mxu0 }
 0xf65   :  { %v1989_v58 = vmul.f32 2.0, %v1934_v56  ;;  %v1985_v59 = vmul.f32 2.0, %v1914_v57  ;;  %v1998_v62 = vsub.f32 %v1978_v8, %v1990_v55  ;;  %v1994_v63 = vsub.f32 %v1966_v54, %v1986_v53 }
 0xf66   :  { %v2426_v60 = vpop.f32.mrf.mxu0  ;;  %v2432_v61 = vpop.f32.mrf.mxu1 }
 0xf67   :  { %v1997_v3 = vsub.f32 %v1975_v6, %v1989_v58  ;;  %v1993_v4 = vsub.f32 %v1963_v30, %v1985_v59  ;;  %v1988_v0 = vmul.f32 2.0, %v2426_v60  ;;  %v1992_v17 = vmul.f32 2.0, %v2432_v61 }
 0xf68   :  { %v1944_v18 = vpop.f32.mrf.mxu1  ;;  %v1924_v35 = vpop.f32.mrf.mxu0  ;;  %v2010_v25 = vsel %vm278_vm2, %v1994_v63, inf  ;;  %v2015_v26 = vsel %vm278_vm2, %v1998_v62, inf }
 0xf69   :  { %v2013_v19 = vsel %vm278_vm2, %v1997_v3, inf  ;;  %v2009_v20 = vsel %vm278_vm2, %v1993_v4, inf  ;;  %v1991_v21 = vmul.f32 2.0, %v1944_v18  ;;  %v1987_v22 = vmul.f32 2.0, %v1924_v35 }
 0xf6a   :  { %v1996_v23 = vsub.f32 %v1972_v33, %v1988_v0  ;;  %v2000_v24 = vsub.f32 %v1984_v13, %v1992_v17  ;;  %v2014_v29 = vmin.f32 %v2009_v20, %v2013_v19  ;;  %v2016_v12 = vmin.f32 %v2010_v25, %v2015_v26 }
 0xf6b   :  { %v1999_v27 = vsub.f32 %v1981_v32, %v1991_v21  ;;  %v1995_v28 = vsub.f32 %v1969_v31, %v1987_v22 }
 0xf6c   :  { %v2012_v9 = vsel %vm278_vm2, %v1996_v23, inf  ;;  %v2019_v51 = vsel %vm278_vm2, %v2000_v24, inf  ;;  %v2021_v36 = vmin.f32 %v2014_v29, %v2016_v12 }
 0xf6d   :  { %v2017_v10 = vsel %vm278_vm2, %v1999_v27, inf  ;;  %v2011_v11 = vsel %vm278_vm2, %v1995_v28, inf  ;;  %v2020_v34 = vmin.f32 %v2012_v9, %v2019_v51 }
 0xf6e   :  { %v2018_v1 = vmin.f32 %v2011_v11, %v2017_v10 }
 0xf70   :  { %v2022_v37 = vmin.f32 %v2018_v1, %v2020_v34 }
 0xf72   :  { %v2023_v38 = vmin.f32 %v2021_v36, %v2022_v37 }
 0xf74   :  { %v2024_v39 = vrot.slane %v2023_v38, 4 }
 0xf76   :  { %v2025_v40 = vmin.f32 %v2023_v38, %v2024_v39 }
 0xf78   :  { %v2026_v2 = vrot.slane %v2025_v40, 2 }
 0xf7a   :  { %v2027_v16 = vmin.f32 %v2025_v40, %v2026_v2 }
 0xf7c   :  { %v2028_v41 = vrot.slane %v2027_v16, 1 }
 0xf7e   :  { %v2029_v44 = vmin.f32 %v2027_v16, %v2028_v41 }
 0xf80   :  { %vm2030_vm0 = vcmp.eq.f32.partialorder %v1993_v4, %v2029_v44  ;;  %vm2031_vm1 = vcmp.eq.f32.partialorder %v1994_v63, %v2029_v44  ;;  %vm2032_vm6 = vcmp.eq.f32.partialorder %v1995_v28, %v2029_v44  ;;  %vm2033_vm7 = vcmp.eq.f32.partialorder %v1996_v23, %v2029_v44 }
 0xf81   :  { %vm2034_vm8 = vcmp.eq.f32.partialorder %v1997_v3, %v2029_v44  ;;  %vm2035_vm9 = vcmp.eq.f32.partialorder %v1998_v62, %v2029_v44  ;;  %vm2036_vm10 = vcmp.eq.f32.partialorder %v1999_v27, %v2029_v44  ;;  %vm2037_vm11 = vcmp.eq.f32.partialorder %v2000_v24, %v2029_v44 }
 0xf82   :  { %v2038_v15 = vsel %vm2030_vm0, %v2618_v14, 64  ;;  %v2039_v48 = vsel %vm2031_vm1, %v31_v42, 64  ;;  %v2040_v49 = vsel %vm2032_vm6, %v32_v7, 64  ;;  %v2041_v30 = vsel %vm2033_vm7, %v33_v43, 64 }
 0xf83   :  { %v2042_v31 = vsel %vm2034_vm8, %v34_v45, 64  ;;  %v2043_v33 = vsel %vm2035_vm9, %v35_v46, 64  ;;  %v2044_v6 = vsel %vm2036_vm10, %v36_v5, 64  ;;  %v2045_v8 = vsel %vm2037_vm11, %v37_v47, 64 }
 0xf84   :  { %v2046_v32 = vsel %vm278_vm2, %v2038_v15, 2147483647  ;;  %v2047_v50 = vsel %vm278_vm2, %v2039_v48, 2147483647  ;;  %v2048_v52 = vsel %vm278_vm2, %v2040_v49, 2147483647 }
 0xf85   :  { %v2049_v53 = vsel %vm278_vm2, %v2041_v30, 2147483647  ;;  %v2050_v55 = vsel %vm278_vm2, %v2042_v31, 2147483647  ;;  %v2053_v54 = vsel %vm278_vm2, %v2043_v33, 2147483647 }
 0xf86   :  { %vm2051_vm12 = vcmp.lt.s32.totalorder %v2046_v32, %v2050_v55  ;;  %vm2054_vm13 = vcmp.lt.s32.totalorder %v2047_v50, %v2053_v54  ;;  %v2056_v14 = vsel %vm278_vm2, %v2044_v6, 2147483647  ;;  %v2059_v56 = vsel %vm278_vm2, %v2045_v8, 2147483647 }
 0xf87   :  { %v2052_v57 = vsel %vm2051_vm12, %v2046_v32, %v2050_v55  ;;  %v2055_v58 = vsel %vm2054_vm13, %v2047_v50, %v2053_v54  ;;  %vm2057_vm15 = vcmp.lt.s32.totalorder %v2048_v52, %v2056_v14  ;;  %vm2060_vm3 = vcmp.lt.s32.totalorder %v2049_v53, %v2059_v56 }
 0xf88   :  { %v2058_v59 = vsel %vm2057_vm15, %v2048_v52, %v2056_v14  ;;  %v2061_v60 = vsel %vm2060_vm3, %v2049_v53, %v2059_v56  ;;  %vm2062_vm4 = vcmp.lt.s32.totalorder %v2052_v57, %v2055_v58  ;;  %vm2077_vm2 = vcmask 57344  }
 0xf89   :  { %v2063_v61 = vsel %vm2062_vm4, %v2052_v57, %v2055_v58  ;;  %vm2064_vm5 = vcmp.lt.s32.totalorder %v2058_v59, %v2061_v60 }
 0xf8a   :  { %v2065_v62 = vsel %vm2064_vm5, %v2058_v59, %v2061_v60 }
 0xf8b   :  { %vm2066_vm14 = vcmp.lt.s32.totalorder %v2063_v61, %v2065_v62 }
 0xf8c   :  { %v2067_v63 = vsel %vm2066_vm14, %v2063_v61, %v2065_v62 }
 0xf8d   :  { %v2068_v3 = vrot.slane %v2067_v63, 4 }
 0xf8f   :  { %vm2069_vm0 = vcmp.lt.s32.totalorder %v2067_v63, %v2068_v3 }
 0xf90   :  { %v2070_v4 = vsel %vm2069_vm0, %v2067_v63, %v2068_v3 }
 0xf91   :  { %v2071_v13 = vrot.slane %v2070_v4, 2 }
 0xf93   :  { %vm2072_vm1 = vcmp.lt.s32.totalorder %v2070_v4, %v2071_v13 }
 0xf94   :  { %v2073_v0 = vsel %vm2072_vm1, %v2070_v4, %v2071_v13 }
 0xf95   :  { %v2074_v17 = vrot.slane %v2073_v0, 1 }
 0xf97   :  { %vm2075_vm6 = vcmp.lt.s32.totalorder %v2073_v0, %v2074_v17 }
 0xf98   :  { %v2076_v18 = vsel %vm2075_vm6, %v2073_v0, %v2074_v17 }
 0xf99   :  { %2078 = vst.msk [vmem:[%s3057_s5] sm:$0x1] %vm2077_vm2, %v2076_v18 }
 0xf9a   :  { %2476 = dma.done.wait [#allocation4], 128  }
 0xf9b   :  { %2477 = vsyncadd [#allocation4], 4294967168 }
 0xf9c   :  { %2101 = vsyncpa [#allocation4], 1 }

</bundles_post_ra>
